<compile_context>
chip_gen: v6e
topology: v6e:2x2x1
jax: 0.10.0
libtpu: 0.0.40
codegen_flags: <defaults>
</compile_context>

<pallas_src>
import functools

import jax
import jax.numpy as jnp
from jax.experimental import pallas as pl
from jax.experimental.pallas import tpu as pltpu

EXPLOSION = 4
EPS = 1e-5
_SLACK = 8          # guard rows above/below the h1 scratch region


# ----------------------------------------------------------------------------
# Kernel: one (batch, row-tile) per grid step.
#   conv1(1x1)+bias+relu  ->  conv2(3x3,pad1)+bias+relu
#   -> conv3(1x1)+bias (+ downsample conv or identity) -> relu
# ----------------------------------------------------------------------------
def _bottleneck_kernel(x_ref, w1_ref, w2_ref, w3_ref, b1_ref, b2_ref, b3_ref,
                       col_ref, *rest, tile_h, width, has_downsample):
    if has_downsample:
        wd_ref, o_ref, h1_ref = rest
    else:
        o_ref, h1_ref = rest

    W = width
    M = tile_h * W                  # output rows in this tile
    M2 = (tile_h + 2) * W           # h1 rows incl. one halo row on each side
    Pp = w1_ref.shape[1]
    Coutp = w3_ref.shape[1]
    Cinp = x_ref.shape[3]

    i = pl.program_id(1)
    row0 = i * tile_h               # top halo row (H-padded coordinates)

    # ---- conv1 (1x1, BN scale folded) + bias + ReLU over tile rows + halo ----
    xh = x_ref[0, pl.ds(row0, tile_h + 2), :, :].reshape(M2, Cinp)
    h1 = jnp.dot(xh, w1_ref[...], preferred_element_type=jnp.float32)
    h1 = jnp.maximum(h1 + b1_ref[...], 0.0)
    h1_ref[_SLACK:_SLACK + M2, :] = h1

    # conv2's zero padding: halo rows that fall outside the image are zero.
    # Only 1 row x W is written, and only on boundary tiles (no full re-zero).
    @pl.when(i == 0)
    def _():
        h1_ref[_SLACK:_SLACK + W, :] = jnp.zeros((W, Pp), h1_ref.dtype)

    @pl.when(i == pl.num_programs(1) - 1)
    def _():
        h1_ref[_SLACK + M2 - W:_SLACK + M2, :] = jnp.zeros((W, Pp),
                                                           h1_ref.dtype)

    # ---- conv2 (3x3, pad 1) as 9 shifted matmuls over the flat h1 buffer ----
    # Output row m = y*W + x needs flat h1 row m + ky*W + (kx-1).  The +/-1
    # column shift wraps across image rows, so it is masked at x==0 / x==W-1.
    # The _SLACK guard rows keep the two off-by-one accesses in-bounds; their
    # (garbage) values are always masked out.
    xcol = col_ref[...]                       # (M, 1) int32: x position per row
    edge_l = xcol == 0                        # invalid for dx = -1
    edge_r = xcol == W - 1                    # invalid for dx = +1

    acc = jnp.zeros((M, Pp), jnp.float32)
    for kx, dx in ((0, -1), (1, 0), (2, 1)):
        part = jnp.zeros((M, Pp), jnp.float32)
        for ky in range(3):
            start = _SLACK + ky * W + dx
            slab = h1_ref[start:start + M, :].astype(w2_ref.dtype)
            part = part + jnp.dot(slab, w2_ref[ky * 3 + kx],
                                  preferred_element_type=jnp.float32)
        if dx == -1:
            part = jnp.where(edge_l, 0.0, part)
        elif dx == 1:
            part = jnp.where(edge_r, 0.0, part)
        acc = acc + part
    h2 = jnp.maximum(acc + b2_ref[...], 0.0)

    # ---- conv3 (1x1) + bias (+ downsample conv or identity) + ReLU ----
    out = jnp.dot(h2.astype(w3_ref.dtype), w3_ref[...],
                  preferred_element_type=jnp.float32)
    xid = x_ref[0, pl.ds(row0 + 1, tile_h), :, :].reshape(M, Cinp)
    if has_downsample:
        # downsample conv shares the same f32 accumulator; its BN bias is
        # already folded into b3.
        out = out + jnp.dot(xid, wd_ref[...],
                            preferred_element_type=jnp.float32)
        out = out + b3_ref[...]
    else:
        out = out + b3_ref[...] + xid.astype(jnp.float32)
    out = jnp.maximum(out, 0.0)
    o_ref[0] = out.reshape(tile_h, W, Coutp).astype(o_ref.dtype)


# ----------------------------------------------------------------------------
# Wrapper helpers
# ----------------------------------------------------------------------------
def _fold_bn(bn):
    gamma, beta, mean, var = bn
    s = gamma / jnp.sqrt(var + EPS)
    b = beta - mean * s
    return s, b


def _pad_dim(c):
    # lane-dense channel count: pad small dims up to one full lane tile (128),
    # otherwise just round up to a sublane multiple.
    if c < 128:
        return 128
    return ((c + 7) // 8) * 8


def _pad_axis(a, axis, target):
    if a.shape[axis] == target:
        return a
    widths = [(0, 0)] * a.ndim
    widths[axis] = (0, target - a.shape[axis])
    return jnp.pad(a, widths)


def _pick_tile_h(H, W, tile_h=None):
    if tile_h is None:
        tile_h = max(1, min(H, 256 // max(W, 1)))   # target ~256 output rows
    tile_h = max(1, min(int(tile_h), H))
    while H % tile_h:
        tile_h -= 1
    return tile_h


# ----------------------------------------------------------------------------
# Wrapper: NCHW in / NCHW out, BN folding, channel padding, tiling.
# ----------------------------------------------------------------------------
def bottleneck_forward(x_nchw, params, in_planes, planes, stride=1,
                       tile_h=None):
    cout = planes * EXPLOSION
    has_downsample = in_planes != cout

    # NCHW -> NHWC; conv1 and the downsample conv are both 1x1 with the same
    # stride, so apply the stride once as spatial subsampling (glue).
    x = jnp.transpose(x_nchw, (0, 2, 3, 1)).astype(jnp.float32)
    if stride > 1:
        x = x[:, ::stride, ::stride, :]
    N, H, W, Cin = x.shape

    P = planes
    Cinp, Pp, Coutp = _pad_dim(Cin), _pad_dim(P), _pad_dim(cout)
    tile_h = _pick_tile_h(H, W, tile_h)
    nh = H // tile_h

    # ---- fold BN into the conv weights (scale) + per-channel bias ----
    s1, b1 = _fold_bn(params["bn1"])
    s2, b2 = _fold_bn(params["bn2"])
    s3, b3 = _fold_bn(params["bn3"])

    w1 = jnp.transpose(params["w1"][:, :, 0, 0], (1, 0)) * s1[None, :]
    w2 = (jnp.transpose(params["w2"], (2, 3, 1, 0))
          * s2[None, None, None, :]).reshape(9, P, P)
    w3 = jnp.transpose(params["w3"][:, :, 0, 0], (1, 0)) * s3[None, :]

    b3_total = b3
    if has_downsample:
        sd, bd = _fold_bn(params["bnd"])
        wd = jnp.transpose(params["wd"][:, :, 0, 0], (1, 0)) * sd[None, :]
        b3_total = b3 + bd

    # ---- pad channels to lane-dense sizes, cast MXU operands to bf16 ----
    w1p = _pad_axis(_pad_axis(w1, 0, Cinp), 1, Pp).astype(jnp.bfloat16)
    w2p = _pad_axis(_pad_axis(w2, 1, Pp), 2, Pp).astype(jnp.bfloat16)
    w3p = _pad_axis(_pad_axis(w3, 0, Pp), 1, Coutp).astype(jnp.bfloat16)
    b1p = _pad_axis(b1, 0, Pp)[None, :].astype(jnp.float32)
    b2p = _pad_axis(b2, 0, Pp)[None, :].astype(jnp.float32)
    b3p = _pad_axis(b3_total, 0, Coutp)[None, :].astype(jnp.float32)

    xp = _pad_axis(x, 3, Cinp)
    xp = jnp.pad(xp, ((0, 0), (1, 1), (0, 0), (0, 0)))     # 1-row H halo
    xp = xp.astype(jnp.bfloat16)
    Hp = H + 2

    # x position of every flattened output row (avoids vector int mod in-kernel)
    col_ids = (jnp.arange(tile_h * W, dtype=jnp.int32) % W).reshape(-1, 1)

    def const_spec(a):
        nd = a.ndim
        return pl.BlockSpec(a.shape, lambda n, i: (0,) * nd)

    in_specs = [
        pl.BlockSpec((1, Hp, W, Cinp), lambda n, i: (n, 0, 0, 0)),
        const_spec(w1p), const_spec(w2p), const_spec(w3p),
        const_spec(b1p), const_spec(b2p), const_spec(b3p),
        const_spec(col_ids),
    ]
    args = [xp, w1p, w2p, w3p, b1p, b2p, b3p, col_ids]
    if has_downsample:
        wdp = _pad_axis(_pad_axis(wd, 0, Cinp), 1, Coutp).astype(jnp.bfloat16)
        in_specs.append(const_spec(wdp))
        args.append(wdp)

    kernel = functools.partial(_bottleneck_kernel, tile_h=tile_h, width=W,
                               has_downsample=has_downsample)

    out = pl.pallas_call(
        kernel,
        out_shape=jax.ShapeDtypeStruct((N, H, W, Coutp), jnp.float32),
        grid_spec=pltpu.PrefetchScalarGridSpec(
            num_scalar_prefetch=0,
            grid=(N, nh),
            in_specs=in_specs,
            out_specs=pl.BlockSpec((1, tile_h, W, Coutp),
                                   lambda n, i: (n, i, 0, 0)),
            scratch_shapes=[
                pltpu.VMEM((2 * _SLACK + (tile_h + 2) * W, Pp), jnp.float32)],
        ),
        compiler_params=pltpu.CompilerParams(
            dimension_semantics=("parallel", "parallel"),
            vmem_limit_bytes=64 * 1024 * 1024),
    )(*args)

    # drop channel padding, NHWC -> NCHW
    return jnp.transpose(out[..., :cout], (0, 3, 1, 2))


# ----------------------------------------------------------------------------
# Deterministic parameter init (shapes from Bottleneck.__init__, torch layout)
# ----------------------------------------------------------------------------
def init_params(key, in_planes, planes):
    exp = EXPLOSION
    ks = jax.random.split(key, 8)

    def w(k, shape):
        return jax.random.normal(k, shape, jnp.float32) * 0.1

    def bn(k, c):
        k1, k2, k3, k4 = jax.random.split(k, 4)
        gamma = jax.random.uniform(k1, (c,), jnp.float32, 0.5, 1.5)
        beta = jax.random.normal(k2, (c,), jnp.float32) * 0.1
        mean = jax.random.normal(k3, (c,), jnp.float32) * 0.1
        var = jax.random.uniform(k4, (c,), jnp.float32, 0.5, 1.5)
        return gamma, beta, mean, var

    return dict(
        w1=w(ks[0], (planes, in_planes, 1, 1)),
        w2=w(ks[1], (planes, planes, 3, 3)),
        w3=w(ks[2], (planes * exp, planes, 1, 1)),
        wd=w(ks[3], (planes * exp, in_planes, 1, 1)),
        bn1=bn(ks[4], planes),
        bn2=bn(ks[5], planes),
        bn3=bn(ks[6], planes * exp),
        bnd=bn(ks[7], planes * exp),
    )


# ----------------------------------------------------------------------------
# Pure-JAX reference (NCHW, lax.conv, f32) for correctness checking.
# ----------------------------------------------------------------------------
def reference_forward(x, params, in_planes, planes, stride=1):
    def conv2d(x, w, stride=1, pad=0):
        return jax.lax.conv_general_dilated(
            x, w, window_strides=(stride, stride),
            padding=[(pad, pad), (pad, pad)],
            dimension_numbers=("NCHW", "OIHW", "NCHW"))

    def bn_apply(x, bn):
        gamma, beta, mean, var = bn
        s = (gamma / jnp.sqrt(var + EPS)).reshape(1, -1, 1, 1)
        b = (beta - mean * gamma / jnp.sqrt(var + EPS)).reshape(1, -1, 1, 1)
        return x * s + b

    has_downsample = in_planes != planes * EXPLOSION
    out = jax.nn.relu(bn_apply(conv2d(x, params["w1"], stride), params["bn1"]))
    out = jax.nn.relu(bn_apply(conv2d(out, params["w2"], 1, 1), params["bn2"]))
    out = bn_apply(conv2d(out, params["w3"]), params["bn3"])
    if has_downsample:
        identity = bn_apply(conv2d(x, params["wd"], stride), params["bnd"])
    else:
        identity = x
    return jax.nn.relu(out + identity)


if __name__ == "__main__":
    key = jax.random.PRNGKey(0)

    # (N, in_planes, planes, H, W, stride, tile_h)
    configs = [
        (2, 16, 8, 8, 8, 1, None),   # downsample path, single row tile
        (2, 32, 8, 8, 8, 1, 4),      # identity path, 2 row tiles (halo logic)
        (2, 16, 8, 8, 8, 2, None),   # stride-2 + downsample
    ]

    for idx, (N, in_planes, planes, H, W, stride, tile_h) in enumerate(configs):
        kx, kp, key = jax.random.split(key, 3)
        x = jax.random.normal(kx, (N, in_planes, H, W), jnp.float32)
        params = init_params(kp, in_planes, planes)

        y = bottleneck_forward(x, params, in_planes, planes, stride=stride,
                               tile_h=tile_h)
        y = jax.block_until_ready(y)

        y_ref = reference_forward(x, params, in_planes, planes, stride=stride)
        assert y.shape == y_ref.shape, (idx, y.shape, y_ref.shape)
        # bf16 MXU inputs vs. the f32 reference -> relaxed tolerance
        max_err = float(jnp.max(jnp.abs(y - y_ref)))
        assert jnp.allclose(y, y_ref, rtol=2e-2, atol=2e-2), (idx, max_err)

    print("KERNEL_OK")
</pallas_src>

<mosaic_0001>
module attributes {stable_mosaic.version = 11 : i64} {
  func.func @_bottleneck_kernel(%arg0: i32, %arg1: i32, %arg2: memref<1x10x8x128xbf16, #tpu.memory_space<vmem>>, %arg3: memref<128x128xbf16, #tpu.memory_space<vmem>>, %arg4: memref<9x128x128xbf16, #tpu.memory_space<vmem>>, %arg5: memref<128x128xbf16, #tpu.memory_space<vmem>>, %arg6: memref<1x128xf32, #tpu.memory_space<vmem>>, %arg7: memref<1x128xf32, #tpu.memory_space<vmem>>, %arg8: memref<1x128xf32, #tpu.memory_space<vmem>>, %arg9: memref<64x1xi32, #tpu.memory_space<vmem>>, %arg10: memref<128x128xbf16, #tpu.memory_space<vmem>>, %arg11: memref<1x8x8x128xf32, #tpu.memory_space<vmem>>, %arg12: memref<96x128xf32, #tpu.memory_space<vmem>>) attributes {dimension_semantics = [#tpu.dimension_semantics<parallel>, #tpu.dimension_semantics<parallel>], iteration_bounds = array<i64: 2, 1>, scalar_prefetch = 0 : i64, scratch_operands = 1 : i64, tpu.core_type = #tpu.core_type<tc>, window_params = [{transform_indices = @transform_0, window_bounds = array<i64: 1, 10, 8, 128>}, {pipeline_mode = #tpu.pipeline_mode<synchronous>, transform_indices = @transform_1, window_bounds = array<i64: 128, 128>}, {pipeline_mode = #tpu.pipeline_mode<synchronous>, transform_indices = @transform_2, window_bounds = array<i64: 9, 128, 128>}, {pipeline_mode = #tpu.pipeline_mode<synchronous>, transform_indices = @transform_3, window_bounds = array<i64: 128, 128>}, {pipeline_mode = #tpu.pipeline_mode<synchronous>, transform_indices = @transform_4, window_bounds = array<i64: 1, 128>}, {pipeline_mode = #tpu.pipeline_mode<synchronous>, transform_indices = @transform_5, window_bounds = array<i64: 1, 128>}, {pipeline_mode = #tpu.pipeline_mode<synchronous>, transform_indices = @transform_6, window_bounds = array<i64: 1, 128>}, {pipeline_mode = #tpu.pipeline_mode<synchronous>, transform_indices = @transform_7, window_bounds = array<i64: 64, 1>}, {pipeline_mode = #tpu.pipeline_mode<synchronous>, transform_indices = @transform_8, window_bounds = array<i64: 128, 128>}, {transform_indices = @transform_9, window_bounds = array<i64: 1, 8, 8, 128>}]} {
    %c8_i32 = arith.constant 8 : i32
    %0 = arith.muli %arg1, %c8_i32 : i32
    %c0 = arith.constant 0 : index
    %1 = arith.index_cast %0 : i32 to index
    %c0_0 = arith.constant 0 : index
    %c0_1 = arith.constant 0 : index
    %2 = vector.load %arg2[%c0, %1, %c0_0, %c0_1] : memref<1x10x8x128xbf16, #tpu.memory_space<vmem>>, vector<1x10x8x128xbf16>
    %3 = vector.shape_cast %2 : vector<1x10x8x128xbf16> to vector<10x8x128xbf16>
    %4 = vector.shape_cast %3 : vector<10x8x128xbf16> to vector<80x128xbf16>
    %c0_2 = arith.constant 0 : index
    %c0_3 = arith.constant 0 : index
    %5 = vector.load %arg3[%c0_2, %c0_3] : memref<128x128xbf16, #tpu.memory_space<vmem>>, vector<128x128xbf16>
    %cst = arith.constant dense<0.000000e+00> : vector<80x128xf32>
    %6 = tpu.matmul %4, %5, %cst {dimension_numbers = #tpu.dot_dimension_numbers<[1], [0], [0], [1], [0, 0, 1, 1], [], []>} : vector<80x128xbf16>, vector<128x128xbf16>, vector<80x128xf32> -> vector<80x128xf32>
    %c0_4 = arith.constant 0 : index
    %c0_5 = arith.constant 0 : index
    %7 = vector.load %arg6[%c0_4, %c0_5] : memref<1x128xf32, #tpu.memory_space<vmem>>, vector<1x128xf32>
    %8 = vector.broadcast %7 : vector<1x128xf32> to vector<80x128xf32>
    %9 = arith.addf %6, %8 : vector<80x128xf32>
    %cst_6 = arith.constant 0.000000e+00 : f32
    %10 = vector.broadcast %cst_6 : f32 to vector<80x128xf32>
    %11 = arith.maximumf %9, %10 : vector<80x128xf32>
    %c8 = arith.constant 8 : index
    %c0_7 = arith.constant 0 : index
    %12 = vector.load %arg12[%c8, %c0_7] : memref<96x128xf32, #tpu.memory_space<vmem>>, vector<80x128xf32>
    tpu.vector_store %arg12[%c8, %c0_7], %11 {strides = array<i32>} : memref<96x128xf32, #tpu.memory_space<vmem>>, vector<80x128xf32>,
    %c0_i32 = arith.constant 0 : i32
    %13 = arith.cmpi eq, %arg1, %c0_i32 : i32
    %14 = arith.extui %13 : i1 to i32
    %c0_i32_8 = arith.constant 0 : i32
    %15 = arith.cmpi ne, %14, %c0_i32_8 : i32
    scf.if %15 {
      %cst_79 = arith.constant 0.000000e+00 : f32
      %118 = vector.broadcast %cst_79 : f32 to vector<8x128xf32>
      %c8_80 = arith.constant 8 : index
      %c0_81 = arith.constant 0 : index
      %119 = vector.load %arg12[%c8_80, %c0_81] : memref<96x128xf32, #tpu.memory_space<vmem>>, vector<8x128xf32>
      tpu.vector_store %arg12[%c8_80, %c0_81], %118 {strides = array<i32>} : memref<96x128xf32, #tpu.memory_space<vmem>>, vector<8x128xf32>,
    } else {
    }
    %c0_i32_9 = arith.constant 0 : i32
    %16 = arith.cmpi eq, %arg1, %c0_i32_9 : i32
    %17 = arith.extui %16 : i1 to i32
    %c0_i32_10 = arith.constant 0 : i32
    %18 = arith.cmpi ne, %17, %c0_i32_10 : i32
    scf.if %18 {
      %cst_79 = arith.constant 0.000000e+00 : f32
      %118 = vector.broadcast %cst_79 : f32 to vector<8x128xf32>
      %c80 = arith.constant 80 : index
      %c0_80 = arith.constant 0 : index
      %119 = vector.load %arg12[%c80, %c0_80] : memref<96x128xf32, #tpu.memory_space<vmem>>, vector<8x128xf32>
      tpu.vector_store %arg12[%c80, %c0_80], %118 {strides = array<i32>} : memref<96x128xf32, #tpu.memory_space<vmem>>, vector<8x128xf32>,
    } else {
    }
    %c0_11 = arith.constant 0 : index
    %c0_12 = arith.constant 0 : index
    %19 = vector.load %arg9[%c0_11, %c0_12] : memref<64x1xi32, #tpu.memory_space<vmem>>, vector<64x1xi32>
    %c0_i32_13 = arith.constant 0 : i32
    %20 = vector.broadcast %c0_i32_13 : i32 to vector<64x1xi32>
    %21 = arith.cmpi eq, %19, %20 : vector<64x1xi32>
    %c7_i32 = arith.constant 7 : i32
    %22 = vector.broadcast %c7_i32 : i32 to vector<64x1xi32>
    %23 = arith.cmpi eq, %19, %22 : vector<64x1xi32>
    %cst_14 = arith.constant 0.000000e+00 : f32
    %24 = vector.broadcast %cst_14 : f32 to vector<64x128xf32>
    %cst_15 = arith.constant 0.000000e+00 : f32
    %25 = vector.broadcast %cst_15 : f32 to vector<64x128xf32>
    %c7 = arith.constant 7 : index
    %c0_16 = arith.constant 0 : index
    %26 = vector.load %arg12[%c7, %c0_16] : memref<96x128xf32, #tpu.memory_space<vmem>>, vector<64x128xf32>
    %27 = arith.truncf %26 : vector<64x128xf32> to vector<64x128xbf16>
    %c0_17 = arith.constant 0 : index
    %c0_18 = arith.constant 0 : index
    %c0_19 = arith.constant 0 : index
    %28 = vector.load %arg4[%c0_17, %c0_18, %c0_19] : memref<9x128x128xbf16, #tpu.memory_space<vmem>>, vector<1x128x128xbf16>
    %29 = vector.shape_cast %28 : vector<1x128x128xbf16> to vector<128x128xbf16>
    %cst_20 = arith.constant dense<0.000000e+00> : vector<64x128xf32>
    %30 = tpu.matmul %27, %29, %cst_20 {dimension_numbers = #tpu.dot_dimension_numbers<[1], [0], [0], [1], [0, 0, 1, 1], [], []>} : vector<64x128xbf16>, vector<128x128xbf16>, vector<64x128xf32> -> vector<64x128xf32>
    %31 = arith.addf %25, %30 : vector<64x128xf32>
    %c15 = arith.constant 15 : index
    %c0_21 = arith.constant 0 : index
    %32 = vector.load %arg12[%c15, %c0_21] : memref<96x128xf32, #tpu.memory_space<vmem>>, vector<64x128xf32>
    %33 = arith.truncf %32 : vector<64x128xf32> to vector<64x128xbf16>
    %c3 = arith.constant 3 : index
    %c0_22 = arith.constant 0 : index
    %c0_23 = arith.constant 0 : index
    %34 = vector.load %arg4[%c3, %c0_22, %c0_23] : memref<9x128x128xbf16, #tpu.memory_space<vmem>>, vector<1x128x128xbf16>
    %35 = vector.shape_cast %34 : vector<1x128x128xbf16> to vector<128x128xbf16>
    %cst_24 = arith.constant dense<0.000000e+00> : vector<64x128xf32>
    %36 = tpu.matmul %33, %35, %cst_24 {dimension_numbers = #tpu.dot_dimension_numbers<[1], [0], [0], [1], [0, 0, 1, 1], [], []>} : vector<64x128xbf16>, vector<128x128xbf16>, vector<64x128xf32> -> vector<64x128xf32>
    %37 = arith.addf %31, %36 : vector<64x128xf32>
    %c23 = arith.constant 23 : index
    %c0_25 = arith.constant 0 : index
    %38 = vector.load %arg12[%c23, %c0_25] : memref<96x128xf32, #tpu.memory_space<vmem>>, vector<64x128xf32>
    %39 = arith.truncf %38 : vector<64x128xf32> to vector<64x128xbf16>
    %c6 = arith.constant 6 : index
    %c0_26 = arith.constant 0 : index
    %c0_27 = arith.constant 0 : index
    %40 = vector.load %arg4[%c6, %c0_26, %c0_27] : memref<9x128x128xbf16, #tpu.memory_space<vmem>>, vector<1x128x128xbf16>
    %41 = vector.shape_cast %40 : vector<1x128x128xbf16> to vector<128x128xbf16>
    %cst_28 = arith.constant dense<0.000000e+00> : vector<64x128xf32>
    %42 = tpu.matmul %39, %41, %cst_28 {dimension_numbers = #tpu.dot_dimension_numbers<[1], [0], [0], [1], [0, 0, 1, 1], [], []>} : vector<64x128xbf16>, vector<128x128xbf16>, vector<64x128xf32> -> vector<64x128xf32>
    %43 = arith.addf %37, %42 : vector<64x128xf32>
    %cst_29 = arith.constant 0.000000e+00 : f32
    %44 = vector.shape_cast %21 : vector<64x1xi1> to vector<64x1xi1>
    %45 = vector.broadcast %44 : vector<64x1xi1> to vector<64x128xi1>
    %46 = vector.broadcast %cst_29 : f32 to vector<64x128xf32>
    %47 = arith.select %45, %46, %43 : vector<64x128xi1>, vector<64x128xf32>
    %48 = arith.addf %24, %47 : vector<64x128xf32>
    %cst_30 = arith.constant 0.000000e+00 : f32
    %49 = vector.broadcast %cst_30 : f32 to vector<64x128xf32>
    %c8_31 = arith.constant 8 : index
    %c0_32 = arith.constant 0 : index
    %50 = vector.load %arg12[%c8_31, %c0_32] : memref<96x128xf32, #tpu.memory_space<vmem>>, vector<64x128xf32>
    %51 = arith.truncf %50 : vector<64x128xf32> to vector<64x128xbf16>
    %c1 = arith.constant 1 : index
    %c0_33 = arith.constant 0 : index
    %c0_34 = arith.constant 0 : index
    %52 = vector.load %arg4[%c1, %c0_33, %c0_34] : memref<9x128x128xbf16, #tpu.memory_space<vmem>>, vector<1x128x128xbf16>
    %53 = vector.shape_cast %52 : vector<1x128x128xbf16> to vector<128x128xbf16>
    %cst_35 = arith.constant dense<0.000000e+00> : vector<64x128xf32>
    %54 = tpu.matmul %51, %53, %cst_35 {dimension_numbers = #tpu.dot_dimension_numbers<[1], [0], [0], [1], [0, 0, 1, 1], [], []>} : vector<64x128xbf16>, vector<128x128xbf16>, vector<64x128xf32> -> vector<64x128xf32>
    %55 = arith.addf %49, %54 : vector<64x128xf32>
    %c16 = arith.constant 16 : index
    %c0_36 = arith.constant 0 : index
    %56 = vector.load %arg12[%c16, %c0_36] : memref<96x128xf32, #tpu.memory_space<vmem>>, vector<64x128xf32>
    %57 = arith.truncf %56 : vector<64x128xf32> to vector<64x128xbf16>
    %c4 = arith.constant 4 : index
    %c0_37 = arith.constant 0 : index
    %c0_38 = arith.constant 0 : index
    %58 = vector.load %arg4[%c4, %c0_37, %c0_38] : memref<9x128x128xbf16, #tpu.memory_space<vmem>>, vector<1x128x128xbf16>
    %59 = vector.shape_cast %58 : vector<1x128x128xbf16> to vector<128x128xbf16>
    %cst_39 = arith.constant dense<0.000000e+00> : vector<64x128xf32>
    %60 = tpu.matmul %57, %59, %cst_39 {dimension_numbers = #tpu.dot_dimension_numbers<[1], [0], [0], [1], [0, 0, 1, 1], [], []>} : vector<64x128xbf16>, vector<128x128xbf16>, vector<64x128xf32> -> vector<64x128xf32>
    %61 = arith.addf %55, %60 : vector<64x128xf32>
    %c24 = arith.constant 24 : index
    %c0_40 = arith.constant 0 : index
    %62 = vector.load %arg12[%c24, %c0_40] : memref<96x128xf32, #tpu.memory_space<vmem>>, vector<64x128xf32>
    %63 = arith.truncf %62 : vector<64x128xf32> to vector<64x128xbf16>
    %c7_41 = arith.constant 7 : index
    %c0_42 = arith.constant 0 : index
    %c0_43 = arith.constant 0 : index
    %64 = vector.load %arg4[%c7_41, %c0_42, %c0_43] : memref<9x128x128xbf16, #tpu.memory_space<vmem>>, vector<1x128x128xbf16>
    %65 = vector.shape_cast %64 : vector<1x128x128xbf16> to vector<128x128xbf16>
    %cst_44 = arith.constant dense<0.000000e+00> : vector<64x128xf32>
    %66 = tpu.matmul %63, %65, %cst_44 {dimension_numbers = #tpu.dot_dimension_numbers<[1], [0], [0], [1], [0, 0, 1, 1], [], []>} : vector<64x128xbf16>, vector<128x128xbf16>, vector<64x128xf32> -> vector<64x128xf32>
    %67 = arith.addf %61, %66 : vector<64x128xf32>
    %68 = arith.addf %48, %67 : vector<64x128xf32>
    %cst_45 = arith.constant 0.000000e+00 : f32
    %69 = vector.broadcast %cst_45 : f32 to vector<64x128xf32>
    %c9 = arith.constant 9 : index
    %c0_46 = arith.constant 0 : index
    %70 = vector.load %arg12[%c9, %c0_46] : memref<96x128xf32, #tpu.memory_space<vmem>>, vector<64x128xf32>
    %71 = arith.truncf %70 : vector<64x128xf32> to vector<64x128xbf16>
    %c2 = arith.constant 2 : index
    %c0_47 = arith.constant 0 : index
    %c0_48 = arith.constant 0 : index
    %72 = vector.load %arg4[%c2, %c0_47, %c0_48] : memref<9x128x128xbf16, #tpu.memory_space<vmem>>, vector<1x128x128xbf16>
    %73 = vector.shape_cast %72 : vector<1x128x128xbf16> to vector<128x128xbf16>
    %cst_49 = arith.constant dense<0.000000e+00> : vector<64x128xf32>
    %74 = tpu.matmul %71, %73, %cst_49 {dimension_numbers = #tpu.dot_dimension_numbers<[1], [0], [0], [1], [0, 0, 1, 1], [], []>} : vector<64x128xbf16>, vector<128x128xbf16>, vector<64x128xf32> -> vector<64x128xf32>
    %75 = arith.addf %69, %74 : vector<64x128xf32>
    %c17 = arith.constant 17 : index
    %c0_50 = arith.constant 0 : index
    %76 = vector.load %arg12[%c17, %c0_50] : memref<96x128xf32, #tpu.memory_space<vmem>>, vector<64x128xf32>
    %77 = arith.truncf %76 : vector<64x128xf32> to vector<64x128xbf16>
    %c5 = arith.constant 5 : index
    %c0_51 = arith.constant 0 : index
    %c0_52 = arith.constant 0 : index
    %78 = vector.load %arg4[%c5, %c0_51, %c0_52] : memref<9x128x128xbf16, #tpu.memory_space<vmem>>, vector<1x128x128xbf16>
    %79 = vector.shape_cast %78 : vector<1x128x128xbf16> to vector<128x128xbf16>
    %cst_53 = arith.constant dense<0.000000e+00> : vector<64x128xf32>
    %80 = tpu.matmul %77, %79, %cst_53 {dimension_numbers = #tpu.dot_dimension_numbers<[1], [0], [0], [1], [0, 0, 1, 1], [], []>} : vector<64x128xbf16>, vector<128x128xbf16>, vector<64x128xf32> -> vector<64x128xf32>
    %81 = arith.addf %75, %80 : vector<64x128xf32>
    %c25 = arith.constant 25 : index
    %c0_54 = arith.constant 0 : index
    %82 = vector.load %arg12[%c25, %c0_54] : memref<96x128xf32, #tpu.memory_space<vmem>>, vector<64x128xf32>
    %83 = arith.truncf %82 : vector<64x128xf32> to vector<64x128xbf16>
    %c8_55 = arith.constant 8 : index
    %c0_56 = arith.constant 0 : index
    %c0_57 = arith.constant 0 : index
    %84 = vector.load %arg4[%c8_55, %c0_56, %c0_57] : memref<9x128x128xbf16, #tpu.memory_space<vmem>>, vector<1x128x128xbf16>
    %85 = vector.shape_cast %84 : vector<1x128x128xbf16> to vector<128x128xbf16>
    %cst_58 = arith.constant dense<0.000000e+00> : vector<64x128xf32>
    %86 = tpu.matmul %83, %85, %cst_58 {dimension_numbers = #tpu.dot_dimension_numbers<[1], [0], [0], [1], [0, 0, 1, 1], [], []>} : vector<64x128xbf16>, vector<128x128xbf16>, vector<64x128xf32> -> vector<64x128xf32>
    %87 = arith.addf %81, %86 : vector<64x128xf32>
    %cst_59 = arith.constant 0.000000e+00 : f32
    %88 = vector.shape_cast %23 : vector<64x1xi1> to vector<64x1xi1>
    %89 = vector.broadcast %88 : vector<64x1xi1> to vector<64x128xi1>
    %90 = vector.broadcast %cst_59 : f32 to vector<64x128xf32>
    %91 = arith.select %89, %90, %87 : vector<64x128xi1>, vector<64x128xf32>
    %92 = arith.addf %68, %91 : vector<64x128xf32>
    %c0_60 = arith.constant 0 : index
    %c0_61 = arith.constant 0 : index
    %93 = vector.load %arg7[%c0_60, %c0_61] : memref<1x128xf32, #tpu.memory_space<vmem>>, vector<1x128xf32>
    %94 = vector.broadcast %93 : vector<1x128xf32> to vector<64x128xf32>
    %95 = arith.addf %92, %94 : vector<64x128xf32>
    %cst_62 = arith.constant 0.000000e+00 : f32
    %96 = vector.broadcast %cst_62 : f32 to vector<64x128xf32>
    %97 = arith.maximumf %95, %96 : vector<64x128xf32>
    %98 = arith.truncf %97 : vector<64x128xf32> to vector<64x128xbf16>
    %c0_63 = arith.constant 0 : index
    %c0_64 = arith.constant 0 : index
    %99 = vector.load %arg5[%c0_63, %c0_64] : memref<128x128xbf16, #tpu.memory_space<vmem>>, vector<128x128xbf16>
    %cst_65 = arith.constant dense<0.000000e+00> : vector<64x128xf32>
    %100 = tpu.matmul %98, %99, %cst_65 {dimension_numbers = #tpu.dot_dimension_numbers<[1], [0], [0], [1], [0, 0, 1, 1], [], []>} : vector<64x128xbf16>, vector<128x128xbf16>, vector<64x128xf32> -> vector<64x128xf32>
    %c1_i32 = arith.constant 1 : i32
    %101 = arith.addi %0, %c1_i32 : i32
    %c0_66 = arith.constant 0 : index
    %102 = arith.index_cast %101 : i32 to index
    %c0_67 = arith.constant 0 : index
    %c0_68 = arith.constant 0 : index
    %103 = vector.load %arg2[%c0_66, %102, %c0_67, %c0_68] : memref<1x10x8x128xbf16, #tpu.memory_space<vmem>>, vector<1x8x8x128xbf16>
    %104 = vector.shape_cast %103 : vector<1x8x8x128xbf16> to vector<8x8x128xbf16>
    %105 = vector.shape_cast %104 : vector<8x8x128xbf16> to vector<64x128xbf16>
    %c0_69 = arith.constant 0 : index
    %c0_70 = arith.constant 0 : index
    %106 = vector.load %arg10[%c0_69, %c0_70] : memref<128x128xbf16, #tpu.memory_space<vmem>>, vector<128x128xbf16>
    %cst_71 = arith.constant dense<0.000000e+00> : vector<64x128xf32>
    %107 = tpu.matmul %105, %106, %cst_71 {dimension_numbers = #tpu.dot_dimension_numbers<[1], [0], [0], [1], [0, 0, 1, 1], [], []>} : vector<64x128xbf16>, vector<128x128xbf16>, vector<64x128xf32> -> vector<64x128xf32>
    %108 = arith.addf %100, %107 : vector<64x128xf32>
    %c0_72 = arith.constant 0 : index
    %c0_73 = arith.constant 0 : index
    %109 = vector.load %arg8[%c0_72, %c0_73] : memref<1x128xf32, #tpu.memory_space<vmem>>, vector<1x128xf32>
    %110 = vector.broadcast %109 : vector<1x128xf32> to vector<64x128xf32>
    %111 = arith.addf %108, %110 : vector<64x128xf32>
    %cst_74 = arith.constant 0.000000e+00 : f32
    %112 = vector.broadcast %cst_74 : f32 to vector<64x128xf32>
    %113 = arith.maximumf %111, %112 : vector<64x128xf32>
    %114 = vector.shape_cast %113 : vector<64x128xf32> to vector<8x8x128xf32>
    %c0_75 = arith.constant 0 : index
    %c0_76 = arith.constant 0 : index
    %c0_77 = arith.constant 0 : index
    %c0_78 = arith.constant 0 : index
    %115 = vector.load %arg11[%c0_75, %c0_76, %c0_77, %c0_78] : memref<1x8x8x128xf32, #tpu.memory_space<vmem>>, vector<1x8x8x128xf32>
    %116 = vector.shape_cast %115 : vector<1x8x8x128xf32> to vector<8x8x128xf32>
    %117 = vector.shape_cast %114 : vector<8x8x128xf32> to vector<1x8x8x128xf32>
    tpu.vector_store %arg11[%c0_75, %c0_76, %c0_77, %c0_78], %117 {strides = array<i32>} : memref<1x8x8x128xf32, #tpu.memory_space<vmem>>, vector<1x8x8x128xf32>,
    return
  }
  func.func @transform_0(%arg0: i32, %arg1: i32) -> (i32, i32, i32, i32) {
    %c0_i32 = arith.constant 0 : i32
    %c0_i32_0 = arith.constant 0 : i32
    %c0_i32_1 = arith.constant 0 : i32
    %c0_i32_2 = arith.constant 0 : i32
    return %arg0, %c0_i32, %c0_i32_0, %c0_i32_1 : i32, i32, i32, i32
  }
  func.func @transform_1(%arg0: i32, %arg1: i32) -> (i32, i32) {
    %c0_i32 = arith.constant 0 : i32
    %c0_i32_0 = arith.constant 0 : i32
    %c0_i32_1 = arith.constant 0 : i32
    return %c0_i32, %c0_i32_0 : i32, i32
  }
  func.func @transform_2(%arg0: i32, %arg1: i32) -> (i32, i32, i32) {
    %c0_i32 = arith.constant 0 : i32
    %c0_i32_0 = arith.constant 0 : i32
    %c0_i32_1 = arith.constant 0 : i32
    %c0_i32_2 = arith.constant 0 : i32
    return %c0_i32, %c0_i32_0, %c0_i32_1 : i32, i32, i32
  }
  func.func @transform_3(%arg0: i32, %arg1: i32) -> (i32, i32) {
    %c0_i32 = arith.constant 0 : i32
    %c0_i32_0 = arith.constant 0 : i32
    %c0_i32_1 = arith.constant 0 : i32
    return %c0_i32, %c0_i32_0 : i32, i32
  }
  func.func @transform_4(%arg0: i32, %arg1: i32) -> (i32, i32) {
    %c0_i32 = arith.constant 0 : i32
    %c0_i32_0 = arith.constant 0 : i32
    %c0_i32_1 = arith.constant 0 : i32
    return %c0_i32, %c0_i32_0 : i32, i32
  }
  func.func @transform_5(%arg0: i32, %arg1: i32) -> (i32, i32) {
    %c0_i32 = arith.constant 0 : i32
    %c0_i32_0 = arith.constant 0 : i32
    %c0_i32_1 = arith.constant 0 : i32
    return %c0_i32, %c0_i32_0 : i32, i32
  }
  func.func @transform_6(%arg0: i32, %arg1: i32) -> (i32, i32) {
    %c0_i32 = arith.constant 0 : i32
    %c0_i32_0 = arith.constant 0 : i32
    %c0_i32_1 = arith.constant 0 : i32
    return %c0_i32, %c0_i32_0 : i32, i32
  }
  func.func @transform_7(%arg0: i32, %arg1: i32) -> (i32, i32) {
    %c0_i32 = arith.constant 0 : i32
    %c0_i32_0 = arith.constant 0 : i32
    %c0_i32_1 = arith.constant 0 : i32
    return %c0_i32, %c0_i32_0 : i32, i32
  }
  func.func @transform_8(%arg0: i32, %arg1: i32) -> (i32, i32) {
    %c0_i32 = arith.constant 0 : i32
    %c0_i32_0 = arith.constant 0 : i32
    %c0_i32_1 = arith.constant 0 : i32
    return %c0_i32, %c0_i32_0 : i32, i32
  }
  func.func @transform_9(%arg0: i32, %arg1: i32) -> (i32, i32, i32, i32) {
    %c0_i32 = arith.constant 0 : i32
    %c0_i32_0 = arith.constant 0 : i32
    %c0_i32_1 = arith.constant 0 : i32
    return %arg0, %arg1, %c0_i32, %c0_i32_0 : i32, i32, i32, i32
  }
}

</mosaic_0001>

<bundles_post_ra>
// kernel: tpu_custom_call.1
= control target key start
LH: loop header
LB: loop body
LE: loop exit
PB: predicated region body
PF: predicated region fallthrough
CT: control target
= control target key end

     0   :  { %s4249_s0 = inlined_call_operand.hbm [shape: bf16[2,10,8,128], index: 0, kind: input, shape index: {}]   ;;  %s4250_s1 = inlined_call_operand.vmem [shape: bf16[128,128], index: 1, kind: input, shape index: {}]   ;;  %s4251_s2 = inlined_call_operand.hbm [shape: bf16[9,128,128], index: 2, kind: input, shape index: {}]   ;;  %s4252_s3 = inlined_call_operand.hbm [shape: bf16[128,128], index: 3, kind: input, shape index: {}]   ;;  %s4253_s4 = inlined_call_operand.vmem [shape: f32[1,128], index: 4, kind: input, shape index: {}]   ;;  %s4254_s5 = inlined_call_operand.vmem [shape: f32[1,128], index: 5, kind: input, shape index: {}]   ;;  %s4255_s6 = inlined_call_operand.vmem [shape: f32[1,128], index: 6, kind: input, shape index: {}]   ;;  %s4256_s7 = inlined_call_operand.vmem [shape: s32[64,1], index: 7, kind: input, shape index: {}]   ;;  %s4257_s8 = inlined_call_operand.hbm [shape: bf16[128,128], index: 8, kind: input, shape index: {}]   ;;  %s4258_s9 = inlined_call_operand.hbm [shape: f32[2,8,8,128], index: 9, kind: output, shape index: {}]  }
   0x1   :  { %4267 = sst [smem:[#allocation32_spill]] %s4251_s2 }
   0x2   :  { %4268 = sst [smem:[#allocation33_spill]] %s4252_s3 }
   0x3   :  { %4269 = sst [smem:[#allocation34_spill]] %s4257_s8 }
   0x4   :  { %14 = vsyncpa [#allocation4], 0 }
   0x5   :  { %16 = vsyncpa [#allocation4 + $0x1], 0 }
   0x6   :  { %17 = vsyncpa [#allocation7], 0 }
   0x7   :  { %18 = vsyncpa [#allocation10], 0 }
   0x8   :  { %19 = vsyncpa [#allocation5], 0 }
   0x9   :  { %21 = vsyncpa [#allocation5 + $0x1], 0  ;;  %s3583_s30 = smov 0   ;;  %s3585_s10 = smov 0  }
   0xa   :  { %s3587_s11 = smov 0   ;;  %s3589_s12 = smov 0  }
   0xb   :  { %s3591_s13 = smov 0   ;;  %s3593_s14 = smov 0  }
   0xc LB: > { %4270 = sst [smem:[#allocation16_spill]] %s3515_s13  ;;  %s2534_s15 = sadd.s32 4294967295, %s3519_s14   ;;  %s3519_s14 = sphi %s3593_s14, %s27_s14   ;;  %s3515_s13 = sphi %s3591_s13, %s4316_s13   ;;  %s3511_s12 = sphi %s3589_s12, %s4315_s12   ;;  %s3507_s11 = sphi %s3587_s11, %s4319_s11   ;;  %s3503_s10 = sphi %s3585_s10, %s4318_s10   ;;  %s3499_s30 = sphi %s3583_s30, %s4317_s30  }
   0xd   : > { %4271 = sst [smem:[#allocation17_spill]] %s3519_s14  ;;  %s2535_s16 = sadd.s32 4294967294, %s3519_s14  }
   0xe   : > { %p59_p0 = scmp.ne.s32.totalorder %s3503_s10, %s3499_s30  ;;  %p3617_p1 = scmp.eq.s32.totalorder %s2534_s15, 0 }
   0xf   : > { %p3621_p2 = scmp.eq.s32.totalorder %s2534_s15, 1  ;;  %p259_p3 = scmp.eq.s32.totalorder %s2535_s16, 1 }
  0x10   : > { %p3627_p4 = por %p3617_p1, %p59_p0  ;;  %p2536_p5 = scmp.ge.s32.totalorder %s3519_s14, 1 }
  0x11   : > { %p3632_p6 = por %p259_p3, %p59_p0  ;;  %p266_p7 = scmp.lt.s32.totalorder %s3519_s14, 3 }
  0x12   : > { %s3521_s22 = smov [#allocation6]   ;;  %s3522_s25 = smov [#allocation8]  }
  0x13   : > { %s4275_s20 = scalar_select %p3632_p6, 1, 0 }
  0x14   : > { %p3637_p8 = pnand %p2536_p5, %p266_p7  ;;  %s281_s23 = sshll.u32 %s3521_s22, 4  ;;  %s282_s23 = int_to_ptr.vmem [resolvable:$true] %s281_s23 }
  0x15   : > { %4276 = sst [smem:[#allocation18_spill]] %s4275_s20  ;;  %s294_s26 = sshll.u32 %s3522_s25, 4  ;;  %s295_s26 = int_to_ptr.vmem [resolvable:$true] %s294_s26 }
  0x16   : > { %p3133_p9 = pneg %p3637_p8  ;;  %s3523_s27 = smov [#allocation9]  }
  0x17   : > { %s319_s28 = sshll.u32 %s3523_s27, 4  ;;  %s3336_s29 = scalar_lea.vmem %s282_s23, 9216  ;;  %s320_s28 = int_to_ptr.vmem [resolvable:$true] %s319_s28 }
  0x18   : > { %p3646_p11 = pnand %p3133_p9, %p3617_p1  ;;  %p3337_p13 = scmp.ne.s32.totalorder %s282_s23, %s3336_s29 }
  0x19   : > { %p3344_p5 = scmp.lt.s32.totalorder %s282_s23, %s282_s23  ;;  %p3345_p7 = scmp.lt.s32.totalorder %s3336_s29, %s3336_s29 }
  0x1a   : > { %p3327_p12 = pneg %p3646_p11 }
  0x1b   : > { %p3346_p9 = por %p3345_p7, %p3344_p5 }
  0x1c   : > { %p3339_p0 = pnand %p3337_p13, %p3327_p12 }
  0x1e   : > { %p3340_p3 = pneg %p3339_p0 }
  0x20   : > { %p3347_p10 = pnand %p3346_p9, %p3340_p3 }
  0x22   : > { %3350 = shalt.err (!%p3347_p10)
}
  0x23   : > { %s4260_s15 = smov 64   ;;  %s4261_s16 = smov 4  }
  0x24   : > { %s4279_s2 = sld [smem:[#allocation32_spill]]  ;;  %s3362_s27 = scalar_lea.vmem %s295_s26, 1024 }
  0x25   : > { %p3363_p13 = scmp.ne.s32.totalorder %s295_s26, %s3362_s27  ;;  %p3370_p3 = scmp.lt.s32.totalorder %s295_s26, %s295_s26 }
  0x26   : > { %p3371_p10 = scmp.lt.s32.totalorder %s3362_s27, %s3362_s27 }
  0x27   : > { %p3365_p0 = pnand %p3363_p13, %p3327_p12 }
  0x28   : > { %p3372_p7 = por %p3371_p10, %p3370_p3 }
  0x29   : > { %p3366_p5 = pneg %p3365_p0 }
  0x2a   : > { %3136 = dma.hbm_to_vmem [thread:$0]  (!%p3646_p11), %s4279_s2, 9216, %s282_s23, [#allocation7], %s4260_s15, %s4260_s15, %s4261_s16  }
  0x2b   : > { %p3373_p9 = pnand %p3372_p7, %p3366_p5 }
  0x2d   : > { %3376 = shalt.err (!%p3373_p9)
}
  0x2e   : > { %s4280_s3 = sld [smem:[#allocation33_spill]]  ;;  %s3388_s23 = scalar_lea.vmem %s320_s28, 1024 }
  0x2f   : > { %p3389_p6 = scmp.ne.s32.totalorder %s320_s28, %s3388_s23  ;;  %p3396_p3 = scmp.lt.s32.totalorder %s320_s28, %s320_s28 }
  0x30   : > { %p3397_p5 = scmp.lt.s32.totalorder %s3388_s23, %s3388_s23 }
  0x31   : > { %p3391_p13 = pnand %p3389_p6, %p3327_p12 }
  0x32   : > { %p3398_p10 = por %p3397_p5, %p3396_p3 }
  0x33   : > { %p3392_p0 = pneg %p3391_p13 }
  0x34   : > { %3139 = dma.hbm_to_vmem [thread:$0]  (!%p3646_p11), %s4280_s3, 1024, %s295_s26, [#allocation7], %s4260_s15, %s4260_s15, %s4261_s16  }
  0x35   : > { %p3399_p7 = pnand %p3398_p10, %p3392_p0 }
  0x37   : > { %3402 = shalt.err (!%p3399_p7)
}
  0x38   : > { %s4281_s8 = sld [smem:[#allocation34_spill]]  ;;  %s46_s26 = sadd.s32 1, %s3507_s11 }
  0x39   : > { %s39_s24 = sadd.s32 1, %s3515_s13  ;;  %p53_p6 = scmp.ne.s32.totalorder %s3507_s11, %s3503_s10 }
  0x3a   : > { %p41_p12 = scmp.ge.s32.totalorder %s39_s24, 2  ;;  %p54_p9 = scmp.eq.s32.totalorder %s3519_s14, 0 }
  0x3b   : > { %p3692_p13 = por %p3621_p2, %p53_p6  ;;  %p3154_p0 = scmp.lt.s32.totalorder %s3519_s14, 2 }
  0x3c   : > { %s4321_s24 = smov (%p41_p12, %s39_s24), 0  ;;  %p55_p3 = por %p54_p9, %p53_p6 }
  0x3d   : > { %4283 = sst [smem:[#allocation19_spill]] %s4321_s24  ;;  %s333_s27 = sand.u32 1, %s3507_s11  }
  0x3e   : > { %3142 = dma.hbm_to_vmem [thread:$0]  (!%p3646_p11), %s4281_s8, 1024, %s320_s28, [#allocation10], %s4260_s15, %s4260_s15, %s4261_s16  }
  0x3f   : > { %s43_s29 = ssub.s32 %s3515_s13, %s4321_s24  ;;  %s3114_s28 = smul.u32 40, %s333_s27 }
  0x40   : > { %p44_p5 = scmp.eq.s32.totalorder %s43_s29, 0  ;;  %s3115_s23 = smul.u32 640, %s3515_s13 }
  0x41   : > { %p3703_p11 = pnand %p3154_p0, %p55_p3  ;;  %s337_s2 = scalar_lea.vmem [#allocation3], %s3114_s28 }
  0x42   : > { %s3708_s18 = scalar_select %p44_p5, %s3507_s11, %s46_s26  }
  0x43   : > { %s343_s16 = scalar_lea.hbm %s4249_s0, %s3115_s23  ;;  %s344_s3 = sshll.u32 %s337_s2, 4  ;;  %s345_s3 = int_to_ptr.vmem [resolvable:$true] %s344_s3 }
  0x44   : > { %s334_s8 = scalar_lea.sflag [#allocation4], %s333_s27  ;;  %p3405_p2 = pneg %p3703_p11 }
  0x45   : > { %s3416_s29 = scalar_lea.vmem %s345_s3, 640  ;;  %s3526_s24 = smov [#allocation3]  }
  0x46   : > { %p3417_p10 = scmp.ne.s32.totalorder %s345_s3, %s3416_s29  ;;  %s3421_s13 = sshll.u32 %s3526_s24, 4  ;;  %s3422_s13 = int_to_ptr.vmem [resolvable:$false] %s3421_s13 }
  0x47   : > { %s3423_s14 = scalar_lea.vmem %s3422_s13, 1280  ;;  %p3424_p12 = scmp.lt.s32.totalorder %s345_s3, %s3422_s13 }
  0x48   : > { %p3419_p7 = pnand %p3417_p10, %p3405_p2  ;;  %p3425_p9 = scmp.lt.s32.totalorder %s3423_s14, %s3416_s29 }
  0x4a   : > { %p3420_p6 = pneg %p3419_p7  ;;  %p3426_p0 = por %p3425_p9, %p3424_p12 }
  0x4c   : > { %p3427_p3 = pnand %p3426_p0, %p3420_p6 }
  0x4e   : > { %3430 = shalt.err (!%p3427_p3)
}
  0x4f   : > { %s4285_s2 = smov 4   ;;  %s4286_s15 = smov 64  }
  0x50   : > { %3146 = dma.hbm_to_vmem [thread:$0]  (!%p3703_p11), %s343_s16, 640, %s345_s3, %s334_s8, %s4286_s15, %s4286_s15, %s4285_s2  }
  0x51   : > { %356 = sbr.rel (%p3637_p8) target bundleno = 919 (0x397), region = 56 }
  0x56   : > { %s3723_s26 = sand.u32 1, %s3503_s10  }
  0x57   : > { %s3116_s13 = smul.u32 40, %s3723_s26  ;;  %s359_s14 = scalar_lea.sflag [#allocation4], %s3723_s26 }
  0x59   : > { %s3727_s24 = scalar_lea.vmem [#allocation3], %s3116_s13 }
  0x5a   : > { %3482 = dma.done.wait (%p3627_p4), %s359_s14, 640  }
  0x5b   : > { %3484 = vsyncadd (%p3627_p4), %s359_s14, 4294966656 }
  0x5c   : > { %3486 = dma.done.wait (%p3617_p1), [#allocation7], 10240  }
  0x5d   : > { %3488 = vsyncadd (%p3617_p1), [#allocation7], 4294957056 }
  0x5e   : > { %3490 = dma.done.wait (%p3617_p1), [#allocation10], 1024  }
  0x5f   : > { %3492 = vsyncadd (%p3617_p1), [#allocation10], 4294966272  ;;  %v3527_v0 = vmov 0.0   ;;  %vm3528_vm0 = vmmov 0   ;;  %v3219_v1 = vld [vmem:[%s4250_s1 + $0x38] sm:$0xff]   ;;  %v3220_v2 = vld [vmem:[%s4250_s1 + $0x30] sm:$0xff]  }
  0x60   : > { %2814 = vmatprep.subr.bf16.mxu0 %v3527_v0  ;;  %2830 = vmatprep.mubr.msk.bf16.mxu0 %vm3528_vm0, %v3527_v0  ;;  %622 = vst [vmem:[#allocation2 + $0x8] sm:$0xff] %v3527_v0  ;;  %623 = vst [vmem:[#allocation2 + $0x50] sm:$0xff] %v3527_v0  ;;  %v3221_v3 = vld [vmem:[%s4250_s1 + $0x28] sm:$0xff]   ;;  %v3222_v4 = vld [vmem:[%s4250_s1 + $0x20] sm:$0xff]   ;;  %v3529_v33 = vmov 0   ;;  %s2546_s16 = sshll.u32 %s3723_s26, 6 }
  0x61   : > { %2815 = vmatpush3.bf16.msra.mxu0 %v3219_v1  ;;  %v3232_v5 = vld [vmem:[#allocation6 + $0xf8] sm:$0xff]   ;;  %v3223_v6 = vld [vmem:[%s4250_s1 + $0x18] sm:$0xff]   ;;  %v3224_v7 = vld [vmem:[%s4250_s1 + $0x10] sm:$0xff]   ;;  %3217 = vset.pattern.permute.xlu0 %v3529_v33  ;;  %s4184_s27 = scalar_lea.vmem [#allocation11], %s2546_s16  ;;  %s2668_s23 = sshll.u32 %s3511_s12, 10 }
  0x62   : > { %2816 = vmatprep.subr.bf16.mxu0 %v3527_v0  ;;  %2850 = vmatprep.subr.bf16.mxu1 %v3232_v5  ;;  %v3225_v8 = vld [vmem:[%s4250_s1 + $0x8] sm:$0xff]   ;;  %v3226_v9 = vld [vmem:[%s4250_s1] sm:$0xff]   ;;  %v3229_v12 = vld [vmem:[%s3727_s24 + $0x10] sm:$0xff]   ;;  %s2415_s28 = sshll.u32 %s4184_s27, 4  ;;  %s4199_s29 = scalar_lea.hbm %s4258_s9, %s2668_s23  ;;  %s4193_s28 = int_to_ptr.vmem [resolvable:$true] %s2415_s28 }
  0x63   : > { %2851 = vmatpush3.bf16.msra.mxu1 %v3232_v5  ;;  %v3227_v10 = vld [vmem:[%s3727_s24] sm:$0xff]   ;;  %v3228_v11 = vld [vmem:[%s3727_s24 + $0x8] sm:$0xff]   ;;  %v3230_v13 = vld [vmem:[%s3727_s24 + $0x18] sm:$0xff]   ;;  %3218 = vset.pattern.permute.xlu1 %v3529_v33  ;;  %s2400_s2 = scalar_lea.sflag [#allocation5], %s3723_s26  ;;  %s3431_s15 = scalar_lea.vmem %s4193_s28, 1024 }
  0x64   : > { %v3231_v14 = vld [vmem:[%s3727_s24 + $0x20] sm:$0xff]   ;;  %v3235_v17 = vld [vmem:[#allocation6 + $0xe8] sm:$0xff]   ;;  %v3237_v19 = vld [vmem:[#allocation6 + $0xe0] sm:$0xff]   ;;  %p3432_p1 = scmp.ne.s32.totalorder %s4193_s28, %s3431_s15  ;;  %s3530_s12 = smov [#allocation11]  }
  0x65   : > { %2817 = vmatpush3.bf16.msra.mxu0 %v3220_v2  ;;  %v3233_v15 = vld [vmem:[#allocation6 + $0xf0] sm:$0xff]   ;;  %v3234_v16 = vld [vmem:[#allocation6 + $0x1b8] sm:$0xff]   ;;  %v3238_v20 = vld [vmem:[#allocation6 + $0x1a8] sm:$0xff]   ;;  %s3435_s13 = sshll.u32 %s3530_s12, 4  ;;  %s3436_s13 = int_to_ptr.vmem [resolvable:$false] %s3435_s13 }
  0x66   : > { %2818 = vmatprep.subr.bf16.mxu0 %v3527_v0  ;;  %2852 = vmatprep.subr.bf16.mxu1 %v3233_v15  ;;  %v3236_v18 = vld [vmem:[#allocation6 + $0x1b0] sm:$0xff]   ;;  %v3239_v21 = vld [vmem:[#allocation6 + $0xd8] sm:$0xff]   ;;  %v3240_v22 = vld [vmem:[#allocation6 + $0x1a0] sm:$0xff]   ;;  %p3433_p4 = pnand %p3432_p1, %p3692_p13  ;;  %s3437_s14 = scalar_lea.vmem %s3436_s13, 2048 }
  0x67   : > { %2853 = vmatpush3.bf16.msra.mxu1 %v3233_v15  ;;  %v3241_v23 = vld [vmem:[#allocation6 + $0xd0] sm:$0xff]   ;;  %v3242_v24 = vld [vmem:[#allocation6 + $0x198] sm:$0xff]   ;;  %v3243_v25 = vld [vmem:[#allocation6 + $0xc8] sm:$0xff]   ;;  %p3438_p5 = scmp.lt.s32.totalorder %s4193_s28, %s3436_s13  ;;  %p3439_p11 = scmp.lt.s32.totalorder %s3437_s14, %s3431_s15 }
  0x68   : > { %2854 = vmatprep.subr.bf16.mxu1 %v3235_v17  ;;  %v3244_v26 = vld [vmem:[#allocation6 + $0x190] sm:$0xff]   ;;  %v3245_v27 = vld [vmem:[#allocation6 + $0xc0] sm:$0xff]   ;;  %v3246_v28 = vld [vmem:[#allocation6 + $0x188] sm:$0xff]   ;;  %p3434_p8 = pneg %p3433_p4 }
  0x69   : > { %2819 = vmatpush3.bf16.msra.mxu0 %v3221_v3  ;;  %v3790_v29 = vld [vmem:[#allocation6 + $0x38] sm:$0xff]   ;;  %v3248_v30 = vld [vmem:[#allocation6 + $0x180] sm:$0xff]   ;;  %v624_v32 = vld [vmem:[%s4256_s7] sm:$0xff]  ;;  %p3440_p2 = por %p3439_p11, %p3438_p5 }
  0x6a   : > { %2820 = vmatprep.subr.bf16.mxu0 %v3527_v0  ;;  %v3793_v31 = vld [vmem:[#allocation6 + $0x78] sm:$0xff]   ;;  %vm632_vm1 = vcmp.eq.s32.totalorder %v624_v32, 0  ;;  %v626_v35 = vld [vmem:[%s4256_s7 + $0x10] sm:$0xff]  ;;  %v627_v40 = vld [vmem:[%s4256_s7 + $0x18] sm:$0xff]  ;;  %vm640_vm4 = vcmp.eq.s32.totalorder %v624_v32, 7 }
  0x6b   : > { %2855 = vmatpush3.bf16.msra.mxu1 %v3235_v17  ;;  %v1074_v34 = vsel %vm632_vm1, 1, %v3529_v33  ;;  %v625_v36 = vld [vmem:[%s4256_s7 + $0x8] sm:$0xff]  ;;  %vm634_vm2 = vcmp.eq.s32.totalorder %v626_v35, 0  ;;  %v3816_v41 = vld [vmem:[%s4253_s4] ss:$0 sm:$0xff]  ;;  %vm635_vm5 = vcmp.eq.s32.totalorder %v627_v40, 0  ;;  %p3441_p10 = pnand %p3440_p2, %p3434_p8 }
  0x6c   : > { %2856 = vmatprep.subr.bf16.mxu1 %v3237_v19  ;;  %1083 = vperm.xlu0 %3217, %v1074_v34   ;;  %vm633_vm3 = vcmp.eq.s32.totalorder %v625_v36, 0  ;;  %v1076_v37 = vsel %vm634_vm2, 1, %v3529_v33  ;;  %v1992_v43 = vsel %vm640_vm4, 1, %v3529_v33  ;;  %v1077_v44 = vsel %vm635_vm5, 1, %v3529_v33  ;;  %v3828_v52 = vld [vmem:[%s4256_s7 + $0x20] sm:$0xff]  ;;  %v3840_v59 = vld [vmem:[%s4256_s7 + $0x28] sm:$0xff] }
  0x6d   : > { %2821 = vmatpush3.bf16.msra.mxu0 %v3222_v4  ;;  %v1075_v38 = vsel %vm633_vm3, 1, %v3529_v33  ;;  %1089 = vperm.xlu1 %3218, %v1076_v37   ;;  %vm641_vm6 = vcmp.eq.s32.totalorder %v625_v36, 7  ;;  %vm642_vm7 = vcmp.eq.s32.totalorder %v626_v35, 7  ;;  %vm643_vm8 = vcmp.eq.s32.totalorder %v627_v40, 7  ;;  %v3845_v60 = vld [vmem:[%s4256_s7 + $0x30] sm:$0xff]  ;;  %v3858_v4 = vld [vmem:[%s4256_s7 + $0x38] sm:$0xff] }
  0x6e   : > { %2822 = vmatprep.subr.bf16.mxu0 %v3527_v0  ;;  %v1993_v48 = vsel %vm641_vm6, 1, %v3529_v33  ;;  %v1994_v49 = vsel %vm642_vm7, 1, %v3529_v33  ;;  %v1995_v54 = vsel %vm643_vm8, 1, %v3529_v33  ;;  %vm636_vm9 = vcmp.eq.s32.totalorder %v3828_v52, 0 }
  0x6f   : > { %2857 = vmatpush3.bf16.msra.mxu1 %v3237_v19  ;;  %v1078_v56 = vsel %vm636_vm9, 1, %v3529_v33  ;;  %vm637_vm10 = vcmp.eq.s32.totalorder %v3840_v59, 0  ;;  %vm638_vm11 = vcmp.eq.s32.totalorder %v3845_v60, 0  ;;  %vm639_vm12 = vcmp.eq.s32.totalorder %v3858_v4, 0 }
  0x70   : > { %2858 = vmatprep.subr.bf16.mxu1 %v3239_v21  ;;  %1086 = vperm.xlu0 %3217, %v1075_v38   ;;  %v1079_v63 = vsel %vm637_vm10, 1, %v3529_v33  ;;  %v1080_v1 = vsel %vm638_vm11, 1, %v3529_v33  ;;  %v3251_v38 = vld [vmem:[#allocation6 + $0x28] sm:$0xff]   ;;  %vm645_vm13 = vcmp.eq.s32.totalorder %v3840_v59, 7  ;;  %vm644_vm14 = vcmp.eq.s32.totalorder %v3828_v52, 7 }
  0x71   : > { %2823 = vmatpush3.bf16.msra.mxu0 %v3223_v6  ;;  %1092 = vperm.xlu1 %3218, %v1077_v44   ;;  %v3253_v44 = vld [vmem:[#allocation6 + $0x20] sm:$0xff]   ;;  %vm647_vm15 = vcmp.eq.s32.totalorder %v3858_v4, 7  ;;  %v3260_v4 = vld [vmem:[#allocation6 + $0x50] sm:$0xff]  }
  0x72   : > { %2824 = vmatprep.subr.bf16.mxu0 %v3527_v0  ;;  %v1999_v52 = vsel %vm647_vm15, 1, %v3529_v33 }
  0x73   : > { %2859 = vmatpush3.bf16.msra.mxu1 %v3239_v21 }
  0x74   : > { %2860 = vmatprep.subr.bf16.mxu1 %v3241_v23  ;;  %2001 = vperm.xlu0 %3217, %v1992_v43  }
  0x75   : > { %2825 = vmatpush3.bf16.msra.mxu0 %v3224_v7  ;;  %2004 = vperm.xlu1 %3218, %v1993_v48   ;;  %v1081_v7 = vsel %vm639_vm12, 1, %v3529_v33  ;;  %v1997_v48 = vsel %vm645_vm13, 1, %v3529_v33 }
  0x76   : > { %2826 = vmatprep.subr.bf16.mxu0 %v3527_v0 }
  0x77   : > { %2861 = vmatpush3.bf16.msra.mxu1 %v3241_v23 }
  0x78   : > { %2862 = vmatprep.subr.bf16.mxu1 %v3243_v25  ;;  %2007 = vperm.xlu0 %3217, %v1994_v49   ;;  %v1996_v49 = vsel %vm644_vm14, 1, %v3529_v33 }
  0x79   : > { %2827 = vmatpush3.bf16.msra.mxu0 %v3225_v8  ;;  %2010 = vperm.xlu1 %3218, %v1995_v54   ;;  %v3256_v54 = vld [vmem:[#allocation6 + $0x60] sm:$0xff]  }
  0x7a   : > { %2828 = vmatprep.subr.bf16.mxu0 %v3527_v0 }
  0x7b   : > { %2863 = vmatpush3.bf16.msra.mxu1 %v3243_v25 }
  0x7c   : > { %2864 = vmatprep.subr.bf16.mxu1 %v3245_v27  ;;  %1095 = vperm.xlu0 %3217, %v1078_v56   ;;  %v648_v56 = vld [vmem:[#allocation2 + $0x7] sm:$0xff] }
  0x7d   : > { %2829 = vmatpush3.bf16.msra.mxu0 %v3226_v9  ;;  %1098 = vperm.xlu1 %3218, %v1079_v63   ;;  %v3258_v63 = vld [vmem:[#allocation6 + $0x58] sm:$0xff]  }
  0x7e   : > { %2898 = vmatprep.subr.bf16.mxu0 %v3234_v16 }
  0x7f   : > { %2865 = vmatpush3.bf16.msra.mxu1 %v3245_v27  ;;  %v3249_v27 = vld [vmem:[#allocation6 + $0x30] sm:$0xff]  }
  0x80   : > { %2831 = vmatmul.mubr.bf16.vlgmr.msra.gmra.mxu0 %v3227_v10  ;;  %2874 = vmatprep.subr.bf16.mxu1 %v3790_v29 }
  0x81   : > { %2834 = vmatprep.mubr.msk.bf16.mxu0 %vm3528_vm0, %v3527_v0  ;;  %2899 = vmatpush3.bf16.msra.mxu0 %v3234_v16 }
  0x82   : > { %2900 = vmatprep.subr.bf16.mxu0 %v3236_v18  ;;  %1101 = vperm.xlu0 %3217, %v1080_v1  }
  0x83   : > { %1104 = vperm.xlu1 %3218, %v1081_v7   ;;  %v3263_v7 = vld [vmem:[#allocation6 + $0x138] sm:$0xff]  }
  0x85   : > { %2901 = vmatpush3.bf16.msra.mxu0 %v3236_v18 }
  0x86   : > { %2902 = vmatprep.subr.bf16.mxu0 %v3238_v20  ;;  %2013 = vperm.xlu0 %3217, %v1996_v49  }
  0x87   : > { %2016 = vperm.xlu1 %3218, %v1997_v48   ;;  %v3288_v48 = vld [vmem:[#allocation6 + $0x220] sm:$0xff]  }
  0x88   : > { %2835 = vmatmul.mubr.bf16.gmra.mxu0 %v3228_v11 }
  0x89   : > { %2838 = vmatprep.mubr.msk.bf16.mxu0 %vm3528_vm0, %v3527_v0  ;;  %2903 = vmatpush3.bf16.msra.mxu0 %v3238_v20 }
  0x8a   : > { %2904 = vmatprep.subr.bf16.mxu0 %v3240_v22 }
  0x8b   : > { %2022 = vperm.xlu1 %3218, %v1999_v52   ;;  %v3294_v52 = vld [vmem:[#allocation6 + $0x208] sm:$0xff]  }
  0x8d   : > { %2905 = vmatpush3.bf16.msra.mxu0 %v3240_v22 }
  0x8e   : > { %2906 = vmatprep.subr.bf16.mxu0 %v3242_v24 }
  0x90   : > { %2839 = vmatmul.mubr.bf16.gmra.mxu0 %v3229_v12 }
  0x91   : > { %2842 = vmatprep.mubr.msk.bf16.mxu0 %vm3528_vm0, %v3527_v0  ;;  %2907 = vmatpush3.bf16.msra.mxu0 %v3242_v24 }
  0x92   : > { %2908 = vmatprep.subr.bf16.mxu0 %v3244_v26 }
  0x95   : > { %2909 = vmatpush3.bf16.msra.mxu0 %v3244_v26 }
  0x96   : > { %2910 = vmatprep.subr.bf16.mxu0 %v3246_v28 }
  0x98   : > { %2843 = vmatmul.mubr.bf16.gmra.mxu0 %v3230_v13 }
  0x99   : > { %2846 = vmatprep.mubr.msk.bf16.mxu0 %vm3528_vm0, %v3527_v0  ;;  %2911 = vmatpush3.bf16.msra.mxu0 %v3246_v28  ;;  %vm646_vm0 = vcmp.eq.s32.totalorder %v3845_v60, 7 }
  0x9a   : > { %2912 = vmatprep.subr.bf16.mxu0 %v3248_v30 }
  0x9d   : > { %2913 = vmatpush3.bf16.msra.mxu0 %v3248_v30 }
  0x9e   : > { %2946 = vmatprep.subr.bf16.mxu0 %v3793_v31 }
  0xa0   : > { %2847 = vmatmul.mubr.bf16.gmra.mxu0 %v3231_v14 }
 0x140   : > { %v559_v39 = vpop.f32.mrf.mxu0 }
 0x141   : > { %v3252_v39 = vld [vmem:[#allocation6 + $0x70] sm:$0xff]  }
 0x142   : > { %v2832_v42 = vpop.f32.mrf.mxu0 }
 0x144   : > { %v562_v45 = vpop.f32.mrf.mxu0 }
 0x145   : > { %v563_v46 = vadd.f32 %v3816_v41, %v562_v45  ;;  %v3254_v45 = vld [vmem:[#allocation6 + $0x68] sm:$0xff]  }
 0x146   : > { %v2833_v47 = vpop.f32.mrf.mxu0 }
 0x147   : > { %v3823_v50 = vmax.f32 %v563_v46, 0.0 }
 0x148   : > { %v567_v51 = vpop.f32.mrf.mxu0 }
 0x149   : > { %609 = vst [vmem:[#allocation2 + $0x10] sm:$0xff] %v3823_v50  ;;  %v568_v53 = vadd.f32 %v3816_v41, %v567_v51 }
 0x14a   : > { %v2836_v55 = vpop.f32.mrf.mxu0 }
 0x14b   : > { %v3835_v57 = vmax.f32 %v568_v53, 0.0  ;;  %v3255_v53 = vld [vmem:[#allocation6 + $0x18] sm:$0xff]   ;;  %v1998_v55 = vsel %vm646_vm0, 1, %v3529_v33  ;;  %v1138_v33 = vpack.c.bf16 %v3823_v50, %v3527_v0  ;;  %v3265_v0 = vld [vmem:[#allocation6 + $0x130] sm:$0xff]  }
 0x14c   : > { %v570_v58 = vpop.f32.mrf.mxu0  ;;  %2019 = vperm.xlu0 %3217, %v1998_v55   ;;  %v3295_v55 = vld [vmem:[#allocation6 + $0xb8] sm:$0xff]  }
 0x14d   : > { %610 = vst [vmem:[#allocation2 + $0x18] sm:$0xff] %v3835_v57  ;;  %v571_v61 = vadd.f32 %v3816_v41, %v570_v58 }
 0x14e   : > { %v2837_v62 = vpop.f32.mrf.mxu0 }
 0x14f   : > { %v3853_v2 = vmax.f32 %v571_v61, 0.0  ;;  %v3257_v61 = vld [vmem:[#allocation6 + $0x10] sm:$0xff]  }
 0x150   : > { %v575_v3 = vpop.f32.mrf.mxu0  ;;  %v3866_v10 = vld [vmem:[#allocation2 + $0xf] sm:$0xff] }
 0x151   : > { %611 = vst [vmem:[#allocation2 + $0x20] sm:$0xff] %v3853_v2  ;;  %v576_v5 = vadd.f32 %v3816_v41, %v575_v3  ;;  %v656_v1 = vpack.c.bf16 %v3866_v10, %v648_v56  ;;  %v3259_v3 = vld [vmem:[#allocation6 + $0x8] sm:$0xff]   ;;  %v3296_v56 = vld [vmem:[#allocation6 + $0x200] sm:$0xff]  }
 0x152   : > { %v2840_v6 = vpop.f32.mrf.mxu0 }
 0x153   : > { %v3864_v8 = vmax.f32 %v576_v5, 0.0  ;;  %v3261_v5 = vld [vmem:[#allocation6] sm:$0xff]   ;;  %v3262_v6 = vld [vmem:[#allocation6 + $0x48] sm:$0xff]  }
 0x154   : > { %v578_v9 = vpop.f32.mrf.mxu0  ;;  %v650_v11 = vld [vmem:[#allocation2 + $0x17] sm:$0xff] }
 0x155   : > { %612 = vst [vmem:[#allocation2 + $0x28] sm:$0xff] %v3864_v8  ;;  %v579_v12 = vadd.f32 %v3816_v41, %v578_v9  ;;  %v677_v13 = vpack.c.bf16 %v650_v11, %v3866_v10  ;;  %v1161_v14 = vpack.c.bf16 %v3864_v8, %v3853_v2  ;;  %v3264_v9 = vld [vmem:[#allocation6 + $0x40] sm:$0xff]   ;;  %v3266_v10 = vld [vmem:[#allocation6 + $0x178] sm:$0xff]  }
 0x156   : > { %v2841_v15 = vpop.f32.mrf.mxu0 }
 0x157   : > { %v3873_v16 = vmax.f32 %v579_v12, 0.0  ;;  %2866 = vmatprep.mubr.bf16.mxu1 %v677_v13  ;;  %v3267_v12 = vld [vmem:[#allocation6 + $0x128] sm:$0xff]   ;;  %v3268_v13 = vld [vmem:[#allocation6 + $0x170] sm:$0xff]  }
 0x158   : > { %v651_v17 = vld [vmem:[#allocation2 + $0x1f] sm:$0xff]  ;;  %v583_v18 = vpop.f32.mrf.mxu0 }
 0x159   : > { %613 = vst [vmem:[#allocation2 + $0x30] sm:$0xff] %v3873_v16  ;;  %v3876_v19 = vpack.c.bf16 %v651_v17, %v650_v11  ;;  %v584_v20 = vadd.f32 %v3816_v41, %v583_v18  ;;  %v3918_v11 = vpack.c.bf16 %v3853_v2, %v3835_v57  ;;  %v3922_v15 = vpack.c.bf16 %v3873_v16, %v3864_v8  ;;  %v3285_v2 = vld [vmem:[#allocation6 + $0x1e0] sm:$0xff]   ;;  %v3286_v8 = vld [vmem:[#allocation6 + $0x228] sm:$0xff]  }
 0x15a   : > { %v2844_v21 = vpop.f32.mrf.mxu0  ;;  %v1160_v18 = vpack.c.bf16 %v3835_v57, %v3823_v50  ;;  %v3273_v57 = vld [vmem:[#allocation6 + $0x110] sm:$0xff]  }
 0x15b   : > { %v3879_v22 = vmax.f32 %v584_v20, 0.0  ;;  %2914 = vmatprep.mubr.bf16.mxu0 %v3876_v19  ;;  %v3929_v20 = vld [vmem:[#allocation2 + $0x19] sm:$0xff] }
 0x15c   : > { %v586_v23 = vpop.f32.mrf.mxu0  ;;  %v652_v24 = vld [vmem:[#allocation2 + $0x27] sm:$0xff] }
 0x15d   : > { %614 = vst [vmem:[#allocation2 + $0x38] sm:$0xff] %v3879_v22  ;;  %v587_v25 = vadd.f32 %v3816_v41, %v586_v23  ;;  %v678_v26 = vpack.c.bf16 %v652_v24, %v651_v17  ;;  %v1162_v28 = vpack.c.bf16 %v3879_v22, %v3873_v16  ;;  %v3269_v17 = vld [vmem:[#allocation6 + $0x120] sm:$0xff]  }
 0x15e   : > { %v2845_v30 = vpop.f32.mrf.mxu0  ;;  %v3935_v23 = vld [vmem:[#allocation2 + $0x11] sm:$0xff] }
 0x15f   : > { %v3886_v32 = vmax.f32 %v587_v25, 0.0  ;;  %2867 = vmatmul.mubr.bf16.vlgmr.msra.gmra.mxu1 %v678_v26  ;;  %v3272_v25 = vld [vmem:[#allocation6 + $0x160] sm:$0xff]   ;;  %v1595_v50 = vpack.c.bf16 %v3929_v20, %v3935_v23  ;;  %v3274_v26 = vld [vmem:[#allocation6 + $0x158] sm:$0xff]   ;;  %v3276_v30 = vld [vmem:[#allocation6 + $0x150] sm:$0xff]  }
 0x160   : > { %2875 = vmatpush3.bf16.msra.mxu1 %v3790_v29  ;;  %v591_v34 = vpop.f32.mrf.mxu0  ;;  %v927_v35 = vld [vmem:[#allocation2 + $0x2f] sm:$0xff] }
 0x161   : > { %615 = vst [vmem:[#allocation2 + $0x40] sm:$0xff] %v3886_v32  ;;  %v592_v36 = vadd.f32 %v3816_v41, %v591_v34  ;;  %2876 = vmatprep.subr.bf16.mxu1 %v3249_v27  ;;  %v3891_v37 = vpack.c.bf16 %v927_v35, %v652_v24  ;;  %v3933_v21 = vpack.c.bf16 %v3886_v32, %v3879_v22  ;;  %v3271_v24 = vld [vmem:[#allocation6 + $0x118] sm:$0xff]   ;;  %v3277_v34 = vld [vmem:[#allocation6 + $0x100] sm:$0xff]  }
 0x162   : > { %v2848_v40 = vpop.f32.mrf.mxu0 }
 0x163   : > { %v3893_v42 = vmax.f32 %v592_v36, 0.0  ;;  %2915 = vmatmul.mubr.bf16.vlgmr.msra.gmra.mxu0 %v3891_v37  ;;  %v3279_v36 = vld [vmem:[#allocation6 + $0x1f8] sm:$0xff]  }
 0x164   : > { %2877 = vmatpush3.bf16.msra.mxu1 %v3249_v27  ;;  %2947 = vmatpush3.bf16.msra.mxu0 %v3793_v31  ;;  %v594_v29 = vpop.f32.mrf.mxu0  ;;  %v654_v43 = vld [vmem:[#allocation2 + $0x37] sm:$0xff]  ;;  %v3940_v40 = vld [vmem:[#allocation2 + $0x29] sm:$0xff] }
 0x165   : > { %616 = vst [vmem:[#allocation2 + $0x48] sm:$0xff] %v3893_v42  ;;  %2878 = vmatprep.subr.bf16.mxu1 %v3251_v38  ;;  %2948 = vmatprep.subr.bf16.mxu0 %v3252_v39  ;;  %v679_v41 = vpack.c.bf16 %v654_v43, %v927_v35  ;;  %v1163_v46 = vpack.c.bf16 %v3893_v42, %v3886_v32  ;;  %v3275_v27 = vld [vmem:[#allocation6 + $0x108] sm:$0xff]   ;;  %v3289_v32 = vld [vmem:[#allocation6 + $0x1d0] sm:$0xff]  }
 0x166   : > { %v2849_v47 = vpop.f32.mrf.mxu0  ;;  %v3278_v35 = vld [vmem:[#allocation6 + $0x148] sm:$0xff]  }
 0x167   : > { %2870 = vmatprep.mubr.bf16.mxu1 %v679_v41  ;;  %v3284_v47 = vld [vmem:[#allocation6 + $0x230] sm:$0xff]  }
 0x168   : > { %2879 = vmatpush3.bf16.msra.mxu1 %v3251_v38  ;;  %2949 = vmatpush3.bf16.msra.mxu0 %v3252_v39  ;;  %v929_v31 = vld [vmem:[#allocation2 + $0x3f] sm:$0xff]  ;;  %v3282_v39 = vld [vmem:[#allocation6 + $0x238] sm:$0xff]  }
 0x169   : > { %2880 = vmatprep.subr.bf16.mxu1 %v3253_v44  ;;  %2950 = vmatprep.subr.bf16.mxu0 %v3254_v45  ;;  %v3906_v51 = vpack.c.bf16 %v929_v31, %v654_v43  ;;  %v3281_v38 = vld [vmem:[#allocation6 + $0x1f0] sm:$0xff]  }
 0x16a   : > { %v3948_v29 = vld [vmem:[#allocation2 + $0x39] sm:$0xff]  ;;  %v1568_v43 = vld [vmem:[#allocation2 + $0x21] sm:$0xff] }
 0x16b   : > { %2918 = vmatprep.mubr.bf16.mxu0 %v3906_v51  ;;  %v1596_v41 = vpack.c.bf16 %v3940_v40, %v1568_v43  ;;  %v3960_v49 = vpack.c.bf16 %v1568_v43, %v3929_v20  ;;  %v3313_v20 = vld [vmem:[#allocation9 + $0x10] sm:$0xff]  }
 0x16c   : > { %2881 = vmatpush3.bf16.msra.mxu1 %v3253_v44  ;;  %2951 = vmatpush3.bf16.msra.mxu0 %v3254_v45  ;;  %v676_v58 = vld [vmem:[#allocation2 + $0x47] sm:$0xff]  ;;  %v931_v59 = vld [vmem:[#allocation2 + $0x4f] sm:$0xff]  ;;  %v3283_v45 = vld [vmem:[#allocation6 + $0x1e8] sm:$0xff]  }
 0x16d   : > { %2882 = vmatprep.subr.bf16.mxu1 %v3255_v53  ;;  %2952 = vmatprep.subr.bf16.mxu0 %v3256_v54  ;;  %v680_v60 = vpack.c.bf16 %v676_v58, %v929_v31  ;;  %v935_v62 = vpack.c.bf16 %v931_v59, %v676_v58  ;;  %v1570_v44 = vld [vmem:[#allocation2 + $0x31] sm:$0xff]  ;;  %v3955_v16 = vld [vmem:[#allocation2 + $0x49] sm:$0xff]  ;;  %v3297_v58 = vld [vmem:[#allocation6 + $0xb0] sm:$0xff]  }
 0x16e   : > { %v1597_v31 = vpack.c.bf16 %v3948_v29, %v1570_v44  ;;  %v3298_v59 = vld [vmem:[#allocation6 + $0xa8] sm:$0xff]  }
 0x16f   : > { %2871 = vmatmul.mubr.bf16.gmra.mxu1 %v680_v60  ;;  %2919 = vmatmul.mubr.bf16.gmra.mxu0 %v935_v62  ;;  %v1851_v60 = vpack.c.bf16 %v1570_v44, %v3940_v40  ;;  %v3324_v62 = vld [vmem:[#allocation2 + $0x8] sm:$0xff] }
 0x170   : > { %2883 = vmatpush3.bf16.msra.mxu1 %v3255_v53  ;;  %2953 = vmatpush3.bf16.msra.mxu0 %v3256_v54  ;;  %v3292_v53 = vld [vmem:[#allocation6 + $0x210] sm:$0xff]   ;;  %v3293_v54 = vld [vmem:[#allocation6 + $0x1c0] sm:$0xff]  }
 0x171   : > { %2890 = vmatprep.mubr.bf16.mxu1 %v656_v1  ;;  %2884 = vmatprep.subr.bf16.mxu1 %v3257_v61  ;;  %v1565_v1 = vld [vmem:[#allocation2 + $0x9] sm:$0xff] }
 0x172   : > { %2954 = vmatprep.subr.bf16.mxu0 %v3258_v63  ;;  %2962 = vmatprep.mubr.bf16.mxu0 %v1138_v33  ;;  %v3299_v33 = vld [vmem:[#allocation6 + $0xa0] sm:$0xff]  }
 0x174   : > { %2885 = vmatpush3.bf16.msra.mxu1 %v3257_v61  ;;  %2955 = vmatpush3.bf16.msra.mxu0 %v3258_v63  ;;  %v1418_v63 = vpack.c.bf16 %v3324_v62, %v3893_v42  ;;  %v3302_v42 = vld [vmem:[#allocation6 + $0x88] sm:$0xff]  }
 0x175   : > { %2886 = vmatprep.subr.bf16.mxu1 %v3259_v3  ;;  %2956 = vmatprep.subr.bf16.mxu0 %v3260_v4 }
 0x178   : > { %2887 = vmatpush3.bf16.msra.mxu1 %v3259_v3  ;;  %2957 = vmatpush3.bf16.msra.mxu0 %v3260_v4  ;;  %v1573_v3 = vpack.c.bf16 %v3935_v23, %v1565_v1  ;;  %v1849_v4 = vld [vmem:[#allocation2 + $0x51] sm:$0xff] }
 0x179   : > { %2888 = vmatprep.subr.bf16.mxu1 %v3261_v5  ;;  %2958 = vmatprep.subr.bf16.mxu0 %v3262_v6  ;;  %v3315_v23 = vld [vmem:[#allocation9 + $0x8] sm:$0xff]  }
 0x17c   : > { %2889 = vmatpush3.bf16.msra.mxu1 %v3261_v5  ;;  %2959 = vmatpush3.bf16.msra.mxu0 %v3262_v6  ;;  %v3300_v5 = vld [vmem:[#allocation6 + $0x98] sm:$0xff]   ;;  %v1853_v6 = vpack.c.bf16 %v1849_v4, %v3955_v16 }
 0x17d   : > { %2922 = vmatprep.subr.bf16.mxu1 %v3263_v7  ;;  %2960 = vmatprep.subr.bf16.mxu0 %v3264_v9 }
 0x17f   : > { %2891 = vmatmul.mubr.bf16.vlgmr.msra.gmra.mxu1 %v3876_v19  ;;  %v3270_v19 = vld [vmem:[#allocation6 + $0x168] sm:$0xff]  }
 0x180   : > { %2894 = vmatprep.mubr.bf16.mxu1 %v3891_v37  ;;  %2923 = vmatpush3.bf16.msra.mxu1 %v3263_v7  ;;  %v3280_v37 = vld [vmem:[#allocation6 + $0x140] sm:$0xff]   ;;  %v3301_v7 = vld [vmem:[#allocation6 + $0x90] sm:$0xff]  }
 0x181   : > { %2961 = vmatpush3.bf16.msra.mxu0 %v3264_v9  ;;  %2924 = vmatprep.subr.bf16.mxu1 %v3265_v0  ;;  %v3303_v9 = vld [vmem:[#allocation6 + $0x80] sm:$0xff]  }
 0x182   : > { %2994 = vmatprep.subr.bf16.mxu0 %v3266_v10 }
 0x184   : > { %2963 = vmatmul.mubr.bf16.vlgmr.msra.gmra.mxu0 %v3918_v11  ;;  %2925 = vmatpush3.bf16.msra.mxu1 %v3265_v0  ;;  %v3304_v0 = vld [vmem:[#allocation9 + $0x38] sm:$0xff]  }
 0x185   : > { %2966 = vmatprep.mubr.bf16.mxu0 %v3922_v15  ;;  %2995 = vmatpush3.bf16.msra.mxu0 %v3266_v10  ;;  %v3305_v10 = vld [vmem:[#allocation9 + $0x30] sm:$0xff]  }
 0x186   : > { %2926 = vmatprep.subr.bf16.mxu1 %v3267_v12  ;;  %2996 = vmatprep.subr.bf16.mxu0 %v3268_v13 }
 0x187   : > { %2895 = vmatmul.mubr.bf16.gmra.mxu1 %v3906_v51  ;;  %v3291_v51 = vld [vmem:[#allocation6 + $0x1c8] sm:$0xff]  }
 0x188   : > { %2927 = vmatpush3.bf16.msra.mxu1 %v3267_v12  ;;  %2938 = vmatprep.mubr.bf16.mxu1 %v1160_v18  ;;  %v3307_v12 = vld [vmem:[#allocation9 + $0x28] sm:$0xff]   ;;  %v3311_v18 = vld [vmem:[#allocation9 + $0x18] sm:$0xff]  }
 0x189   : > { %2997 = vmatpush3.bf16.msra.mxu0 %v3268_v13  ;;  %2928 = vmatprep.subr.bf16.mxu1 %v3269_v17  ;;  %v3308_v13 = vld [vmem:[#allocation8 + $0x30] sm:$0xff]  }
 0x18a   : > { %2998 = vmatprep.subr.bf16.mxu0 %v3270_v19 }
 0x18c   : > { %2967 = vmatmul.mubr.bf16.gmra.mxu0 %v3933_v21  ;;  %2929 = vmatpush3.bf16.msra.mxu1 %v3269_v17  ;;  %v3310_v17 = vld [vmem:[#allocation8 + $0x28] sm:$0xff]  }
 0x18d   : > { %2999 = vmatpush3.bf16.msra.mxu0 %v3270_v19  ;;  %3010 = vmatprep.mubr.bf16.mxu0 %v1595_v50  ;;  %v3312_v19 = vld [vmem:[#allocation8 + $0x20] sm:$0xff]  }
 0x18e   : > { %2930 = vmatprep.subr.bf16.mxu1 %v3271_v24  ;;  %3000 = vmatprep.subr.bf16.mxu0 %v3272_v25  ;;  %v3317_v50 = vld [vmem:[#allocation9] sm:$0xff]  }
 0x190   : > { %2931 = vmatpush3.bf16.msra.mxu1 %v3271_v24  ;;  %v3316_v24 = vld [vmem:[#allocation8 + $0x10] sm:$0xff]  }
 0x191   : > { %3001 = vmatpush3.bf16.msra.mxu0 %v3272_v25  ;;  %2932 = vmatprep.subr.bf16.mxu1 %v3273_v57 }
 0x192   : > { %3002 = vmatprep.subr.bf16.mxu0 %v3274_v26 }
 0x194   : > { %2933 = vmatpush3.bf16.msra.mxu1 %v3273_v57  ;;  %v3318_v57 = vld [vmem:[#allocation8 + $0x8] sm:$0xff]  }
 0x195   : > { %3003 = vmatpush3.bf16.msra.mxu0 %v3274_v26  ;;  %2934 = vmatprep.subr.bf16.mxu1 %v3275_v27  ;;  %v3319_v26 = vld [vmem:[%s3727_s24 + $0x4] sm:$0xff]  }
 0x196   : > { %3004 = vmatprep.subr.bf16.mxu0 %v3276_v30 }
 0x198   : > { %2935 = vmatpush3.bf16.msra.mxu1 %v3275_v27 }
 0x199   : > { %3005 = vmatpush3.bf16.msra.mxu0 %v3276_v30  ;;  %2936 = vmatprep.subr.bf16.mxu1 %v3277_v34  ;;  %v3320_v30 = vld [vmem:[%s3727_s24 + $0xc] sm:$0xff]  }
 0x19a   : > { %3006 = vmatprep.subr.bf16.mxu0 %v3278_v35 }
 0x19c   : > { %2937 = vmatpush3.bf16.msra.mxu1 %v3277_v34  ;;  %v3321_v34 = vld [vmem:[#allocation8] sm:$0xff]  }
 0x19d   : > { %3007 = vmatpush3.bf16.msra.mxu0 %v3278_v35  ;;  %2970 = vmatprep.subr.bf16.mxu1 %v3279_v36 }
 0x19e   : > { %3008 = vmatprep.subr.bf16.mxu0 %v3280_v37 }
 0x19f   : > { %2939 = vmatmul.mubr.bf16.vlgmr.msra.gmra.mxu1 %v1161_v14  ;;  %v1572_v14 = vld [vmem:[#allocation2 + $0x41] sm:$0xff] }
 0x1a0   : > { %2942 = vmatprep.mubr.bf16.mxu1 %v1162_v28  ;;  %2971 = vmatpush3.bf16.msra.mxu1 %v3279_v36  ;;  %v1598_v22 = vpack.c.bf16 %v3955_v16, %v1572_v14  ;;  %v3287_v28 = vld [vmem:[#allocation6 + $0x1d8] sm:$0xff]   ;;  %v1852_v61 = vpack.c.bf16 %v1572_v14, %v3948_v29  ;;  %v3322_v36 = vld [vmem:[%s3727_s24 + $0x14] sm:$0xff]  }
 0x1a1   : > { %3009 = vmatpush3.bf16.msra.mxu0 %v3280_v37  ;;  %2972 = vmatprep.subr.bf16.mxu1 %v3281_v38  ;;  %v3323_v37 = vld [vmem:[%s3727_s24 + $0x1c] sm:$0xff]  }
 0x1a2   : > { %3042 = vmatprep.subr.bf16.mxu0 %v3282_v39 }
 0x1a4   : > { %3011 = vmatmul.mubr.bf16.vlgmr.msra.gmra.mxu0 %v1596_v41  ;;  %2973 = vmatpush3.bf16.msra.mxu1 %v3281_v38 }
 0x1a5   : > { %3014 = vmatprep.mubr.bf16.mxu0 %v1597_v31  ;;  %3043 = vmatpush3.bf16.msra.mxu0 %v3282_v39 }
 0x1a6   : > { %2974 = vmatprep.subr.bf16.mxu1 %v3283_v45  ;;  %3044 = vmatprep.subr.bf16.mxu0 %v3284_v47 }
 0x1a7   : > { %2943 = vmatmul.mubr.bf16.gmra.mxu1 %v1163_v46  ;;  %v3290_v46 = vld [vmem:[#allocation6 + $0x218] sm:$0xff]  }
 0x1a8   : > { %2975 = vmatpush3.bf16.msra.mxu1 %v3283_v45  ;;  %2986 = vmatprep.mubr.bf16.mxu1 %v3918_v11  ;;  %v3306_v11 = vld [vmem:[#allocation8 + $0x38] sm:$0xff]  }
 0x1a9   : > { %3045 = vmatpush3.bf16.msra.mxu0 %v3284_v47  ;;  %2976 = vmatprep.subr.bf16.mxu1 %v3285_v2 }
 0x1aa   : > { %3046 = vmatprep.subr.bf16.mxu0 %v3286_v8 }
 0x1ac   : > { %3015 = vmatmul.mubr.bf16.gmra.mxu0 %v1598_v22  ;;  %2977 = vmatpush3.bf16.msra.mxu1 %v3285_v2 }
 0x1ad   : > { %3047 = vmatpush3.bf16.msra.mxu0 %v3286_v8  ;;  %3058 = vmatprep.mubr.bf16.mxu0 %v3960_v49 }
 0x1ae   : > { %2978 = vmatprep.subr.bf16.mxu1 %v3287_v28  ;;  %3048 = vmatprep.subr.bf16.mxu0 %v3288_v48 }
 0x1b0   : > { %2979 = vmatpush3.bf16.msra.mxu1 %v3287_v28 }
 0x1b1   : > { %3049 = vmatpush3.bf16.msra.mxu0 %v3288_v48  ;;  %2980 = vmatprep.subr.bf16.mxu1 %v3289_v32 }
 0x1b2   : > { %3050 = vmatprep.subr.bf16.mxu0 %v3290_v46 }
 0x1b4   : > { %2981 = vmatpush3.bf16.msra.mxu1 %v3289_v32 }
 0x1b5   : > { %3051 = vmatpush3.bf16.msra.mxu0 %v3290_v46  ;;  %2982 = vmatprep.subr.bf16.mxu1 %v3291_v51 }
 0x1b6   : > { %3052 = vmatprep.subr.bf16.mxu0 %v3292_v53 }
 0x1b8   : > { %2983 = vmatpush3.bf16.msra.mxu1 %v3291_v51 }
 0x1b9   : > { %3053 = vmatpush3.bf16.msra.mxu0 %v3292_v53  ;;  %2984 = vmatprep.subr.bf16.mxu1 %v3293_v54 }
 0x1ba   : > { %3054 = vmatprep.subr.bf16.mxu0 %v3294_v52 }
 0x1bc   : > { %2985 = vmatpush3.bf16.msra.mxu1 %v3293_v54 }
 0x1bd   : > { %3055 = vmatpush3.bf16.msra.mxu0 %v3294_v52  ;;  %3018 = vmatprep.subr.bf16.mxu1 %v3295_v55 }
 0x1be   : > { %3056 = vmatprep.subr.bf16.mxu0 %v3296_v56 }
 0x1bf   : > { %2987 = vmatmul.mubr.bf16.vlgmr.msra.gmra.mxu1 %v3922_v15  ;;  %v3309_v15 = vld [vmem:[#allocation9 + $0x20] sm:$0xff]  }
 0x1c0   : > { %2990 = vmatprep.mubr.bf16.mxu1 %v3933_v21  ;;  %3019 = vmatpush3.bf16.msra.mxu1 %v3295_v55  ;;  %v3314_v21 = vld [vmem:[#allocation8 + $0x18] sm:$0xff]  }
 0x1c1   : > { %3057 = vmatpush3.bf16.msra.mxu0 %v3296_v56  ;;  %3020 = vmatprep.subr.bf16.mxu1 %v3297_v58 }
 0x1c2   : > { %3090 = vmatprep.subr.bf16.mxu0 %v3306_v11 }
 0x1c4   : > { %3059 = vmatmul.mubr.bf16.vlgmr.msra.gmra.mxu0 %v1851_v60  ;;  %3021 = vmatpush3.bf16.msra.mxu1 %v3297_v58 }
 0x1c5   : > { %3062 = vmatprep.mubr.bf16.mxu0 %v1852_v61  ;;  %3022 = vmatprep.subr.bf16.mxu1 %v3298_v59 }
 0x1c6   : > { %3091 = vmatpush3.bf16.msra.mxu0 %v3306_v11 }
 0x1c7   : > { %2991 = vmatmul.mubr.bf16.gmra.mxu1 %v1418_v63  ;;  %3092 = vmatprep.subr.bf16.mxu0 %v3308_v13 }
 0x1c8   : > { %3023 = vmatpush3.bf16.msra.mxu1 %v3298_v59  ;;  %3034 = vmatprep.mubr.bf16.mxu1 %v1573_v3 }
 0x1c9   : > { %3024 = vmatprep.subr.bf16.mxu1 %v3299_v33 }
 0x1ca   : > { %3093 = vmatpush3.bf16.msra.mxu0 %v3308_v13 }
 0x1cb   : > { %3094 = vmatprep.subr.bf16.mxu0 %v3310_v17 }
 0x1cc   : > { %3063 = vmatmul.mubr.bf16.gmra.mxu0 %v1853_v6  ;;  %3025 = vmatpush3.bf16.msra.mxu1 %v3299_v33 }
 0x1cd   : > { %3026 = vmatprep.subr.bf16.mxu1 %v3300_v5 }
 0x1ce   : > { %3095 = vmatpush3.bf16.msra.mxu0 %v3310_v17 }
 0x1cf   : > { %3096 = vmatprep.subr.bf16.mxu0 %v3312_v19 }
 0x1d0   : > { %3027 = vmatpush3.bf16.msra.mxu1 %v3300_v5  ;;  %v4039_v5 = vpop.permute.xlu0 %1083 }
 0x1d1   : > { %3028 = vmatprep.subr.bf16.mxu1 %v3301_v7  ;;  %vm1106_vm1 = vcmp.eq.s32.totalorder %v4039_v5, 1 }
 0x1d2   : > { %3097 = vmatpush3.bf16.msra.mxu0 %v3312_v19 }
 0x1d3   : > { %3098 = vmatprep.subr.bf16.mxu0 %v3314_v21 }
 0x1d4   : > { %3029 = vmatpush3.bf16.msra.mxu1 %v3301_v7 }
 0x1d5   : > { %3030 = vmatprep.subr.bf16.mxu1 %v3302_v42 }
 0x1d6   : > { %3099 = vmatpush3.bf16.msra.mxu0 %v3314_v21 }
 0x1d7   : > { %3100 = vmatprep.subr.bf16.mxu0 %v3316_v24 }
 0x1d8   : > { %3031 = vmatpush3.bf16.msra.mxu1 %v3302_v42  ;;  %v1090_v42 = vpop.permute.xlu1 %1089 }
 0x1d9   : > { %3032 = vmatprep.subr.bf16.mxu1 %v3303_v9  ;;  %vm1108_vm2 = vcmp.eq.s32.totalorder %v1090_v42, 1 }
 0x1da   : > { %3101 = vmatpush3.bf16.msra.mxu0 %v3316_v24 }
 0x1db   : > { %3102 = vmatprep.subr.bf16.mxu0 %v3318_v57 }
 0x1dc   : > { %3033 = vmatpush3.bf16.msra.mxu1 %v3303_v9  ;;  %v1093_v13 = vpop.permute.xlu1 %1092 }
 0x1dd   : > { %3066 = vmatprep.subr.bf16.mxu1 %v3304_v0  ;;  %vm1109_vm4 = vcmp.eq.s32.totalorder %v1093_v13, 1 }
 0x1de   : > { %3103 = vmatpush3.bf16.msra.mxu0 %v3318_v57 }
 0x1df   : > { %3035 = vmatmul.mubr.bf16.vlgmr.msra.gmra.mxu1 %v3960_v49  ;;  %3104 = vmatprep.subr.bf16.mxu0 %v3321_v34 }
 0x1e0   : > { %3038 = vmatprep.mubr.bf16.mxu1 %v1851_v60  ;;  %3067 = vmatpush3.bf16.msra.mxu1 %v3304_v0  ;;  %v1087_v0 = vpop.permute.xlu0 %1086  ;;  %v4055_v19 = vpop.permute.xlu1 %2004 }
 0x1e1   : > { %3068 = vmatprep.subr.bf16.mxu1 %v3305_v10  ;;  %vm1107_vm3 = vcmp.eq.s32.totalorder %v1087_v0, 1  ;;  %vm2025_vm11 = vcmp.eq.s32.totalorder %v4055_v19, 1 }
 0x1e2   : > { %3105 = vmatpush3.bf16.msra.mxu0 %v3321_v34 }
 0x1e4   : > { %3069 = vmatpush3.bf16.msra.mxu1 %v3305_v10  ;;  %v4067_v57 = vpop.permute.xlu1 %2010 }
 0x1e5   : > { %3070 = vmatprep.subr.bf16.mxu1 %v3307_v12  ;;  %vm2027_vm9 = vcmp.eq.s32.totalorder %v4067_v57, 1 }
 0x1e7   : > { %3039 = vmatmul.mubr.bf16.gmra.mxu1 %v1852_v61 }
 0x1e8   : > { %3071 = vmatpush3.bf16.msra.mxu1 %v3307_v12  ;;  %3082 = vmatprep.mubr.bf16.mxu1 %v3319_v26 }
 0x1e9   : > { %3072 = vmatprep.subr.bf16.mxu1 %v3309_v15 }
 0x1ec   : > { %3073 = vmatpush3.bf16.msra.mxu1 %v3309_v15  ;;  %v4051_v15 = vpop.permute.xlu0 %2001 }
 0x1ed   : > { %3074 = vmatprep.subr.bf16.mxu1 %v3311_v18  ;;  %vm2024_vm5 = vcmp.eq.s32.totalorder %v4051_v15, 1 }
 0x1f0   : > { %3075 = vmatpush3.bf16.msra.mxu1 %v3311_v18 }
 0x1f1   : > { %3076 = vmatprep.subr.bf16.mxu1 %v3313_v20 }
 0x1f4   : > { %3077 = vmatpush3.bf16.msra.mxu1 %v3313_v20 }
 0x1f5   : > { %3078 = vmatprep.subr.bf16.mxu1 %v3315_v23 }
 0x1f8   : > { %3079 = vmatpush3.bf16.msra.mxu1 %v3315_v23  ;;  %v4061_v23 = vpop.permute.xlu0 %2007 }
 0x1f9   : > { %3080 = vmatprep.subr.bf16.mxu1 %v3317_v50  ;;  %vm2026_vm6 = vcmp.eq.s32.totalorder %v4061_v23, 1 }
 0x1fc   : > { %3081 = vmatpush3.bf16.msra.mxu1 %v3317_v50  ;;  %v1096_v26 = vpop.permute.xlu0 %1095 }
 0x1fd   : > { %vm1110_vm7 = vcmp.eq.s32.totalorder %v1096_v26, 1 }
 0x1ff   : > { %3083 = vmatmul.mubr.bf16.vlgmr.msra.gmra.mxu1 %v3320_v30 }
 0x200   : > { %3086 = vmatprep.mubr.bf16.mxu1 %v3322_v36 }
 0x207   : > { %3087 = vmatmul.mubr.bf16.gmra.mxu1 %v3323_v37  ;;  %v4073_v37 = vpop.permute.xlu1 %1098 }
 0x208   : > { %4298 = vst [vmem:[#allocation31_spill] sm:$0xff] %v4073_v37 }
 0x21f   : > { %v3971_v25 = vpop.f32.mrf.mxu1 }
 0x221   : > { %v3974_v27 = vpop.f32.mrf.mxu1 }
 0x223   : > { %v3977_v35 = vpop.f32.mrf.mxu1  ;;  %v3985_v40 = vpop.f32.mrf.mxu0 }
 0x225   : > { %v3981_v38 = vpop.f32.mrf.mxu1  ;;  %v3989_v43 = vpop.f32.mrf.mxu0 }
 0x227   : > { %v3993_v44 = vpop.f32.mrf.mxu0 }
 0x229   : > { %v3997_v31 = vpop.f32.mrf.mxu0 }
 0x22f   : > { %v3983_v39 = vpop.f32.mrf.mxu1  ;;  %v3999_v2 = vpop.f32.mrf.mxu0 }
 0x231   : > { %v3987_v29 = vpop.f32.mrf.mxu1  ;;  %v4001_v14 = vpop.f32.mrf.mxu0 }
 0x233   : > { %v3991_v41 = vpop.f32.mrf.mxu1  ;;  %v4003_v22 = vpop.f32.mrf.mxu0 }
 0x235   : > { %v3995_v45 = vpop.f32.mrf.mxu1  ;;  %v4005_v48 = vpop.f32.mrf.mxu0 }
 0x23f   : > { %v2892_v47 = vpop.f32.mrf.mxu1 }
 0x241   : > { %v893_v8 = vpop.f32.mrf.mxu1 }
 0x243   : > { %v2893_v16 = vpop.f32.mrf.mxu1 }
 0x244   : > { %v4007_v32 = vpop.f32.mrf.mxu0 }
 0x245   : > { %v896_v28 = vpop.f32.mrf.mxu1 }
 0x246   : > { %v4009_v51 = vpop.f32.mrf.mxu0 }
 0x247   : > { %v2896_v49 = vpop.f32.mrf.mxu1 }
 0x248   : > { %v4013_v54 = vpop.f32.mrf.mxu0 }
 0x249   : > { %v909_v46 = vpop.f32.mrf.mxu1 }
 0x24a   : > { %v4017_v55 = vpop.f32.mrf.mxu0 }
 0x24b   : > { %v4011_v53 = vpop.f32.mrf.mxu1 }
 0x24c   : > { %v4019_v58 = vpop.f32.mrf.mxu0 }
 0x24d   : > { %v4015_v52 = vpop.f32.mrf.mxu1 }
 0x24e   : > { %v4023_v60 = vpop.f32.mrf.mxu0 }
 0x250   : > { %v4027_v62 = vpop.f32.mrf.mxu0 }
 0x251   : > { %4287 = vst [vmem:[#allocation20_spill] sm:$0xff] %v4027_v62  ;;  %v905_v62 = vadd.f32 %v2893_v16, %v3977_v35 }
 0x252   : > { %v4031_v1 = vpop.f32.mrf.mxu0 }
 0x253   : > { %4288 = vst [vmem:[#allocation21_spill] sm:$0xff] %v4031_v1  ;;  %v902_v1 = vadd.f32 %v2892_v47, %v3971_v25  ;;  %v921_v47 = vadd.f32 %v4011_v53, %v3991_v41 }
 0x255   : > { %v1068_v25 = vadd.f32 %v3985_v40, %v902_v1 }
 0x25f   : > { %v2940_v56 = vpop.f32.mrf.mxu1 }
 0x261   : > { %v4021_v59 = vpop.f32.mrf.mxu1 }
 0x262   : > { %v1377_v41 = vadd.f32 %v4009_v51, %v4021_v59 }
 0x263   : > { %v4025_v61 = vpop.f32.mrf.mxu1 }
 0x264   : > { %v4035_v3 = vpop.f32.mrf.mxu0 }
 0x265   : > { %v4029_v63 = vpop.f32.mrf.mxu1 }
 0x266   : > { %v4041_v6 = vpop.f32.mrf.mxu0 }
 0x267   : > { %v4033_v33 = vpop.f32.mrf.mxu1 }
 0x268   : > { %v4045_v9 = vpop.f32.mrf.mxu0  ;;  %v1401_v0 = vadd.f32 %v4019_v58, %v4033_v33 }
 0x269   : > { %v4037_v4 = vpop.f32.mrf.mxu1 }
 0x26a   : > { %v4049_v11 = vpop.f32.mrf.mxu0 }
 0x26b   : > { %v4043_v7 = vpop.f32.mrf.mxu1  ;;  %4291 = vst [vmem:[#allocation24_spill] sm:$0xff] %v4049_v11  ;;  %v918_v11 = vadd.f32 %v2896_v49, %v3983_v39 }
 0x26c   : > { %4289 = vst [vmem:[#allocation22_spill] sm:$0xff] %v4043_v7  ;;  %v4053_v17 = vpop.f32.mrf.mxu0  ;;  %v897_v7 = vadd.f32 %v896_v28, %v3981_v38  ;;  %v1069_v38 = vadd.f32 %v3993_v44, %v905_v62  ;;  %v913_v44 = vadd.f32 %v4015_v52, %v3995_v45  ;;  %v1073_v52 = vadd.f32 %v4003_v22, %v921_v47 }
 0x26d   : > { %v4047_v10 = vpop.f32.mrf.mxu1  ;;  %4292 = vst [vmem:[#allocation25_spill] sm:$0xff] %v4053_v17 }
 0x26e   : > { %4290 = vst [vmem:[#allocation23_spill] sm:$0xff] %v4047_v10  ;;  %v4057_v20 = vpop.f32.mrf.mxu0  ;;  %v1067_v39 = vadd.f32 %v3997_v31, %v897_v7  ;;  %v4125_v1 = vadd.f32 %v4005_v48, %v913_v44  ;;  %v1393_v48 = vadd.f32 %v4023_v60, %v4037_v4  ;;  %v2633_v4 = vld [vmem:[%s4254_s5] ss:$0 sm:$0xff] }
 0x26f   : > { %4293 = vst [vmem:[#allocation26_spill] sm:$0xff] %v4057_v20  ;;  %v1102_v20 = vpop.permute.xlu0 %1101 }
 0x270   : > { %v4063_v24 = vpop.f32.mrf.mxu0  ;;  %vm1112_vm8 = vcmp.eq.s32.totalorder %v1102_v20, 1  ;;  %v1115_v45 = vsel %vm1107_vm3, 0.0, %v1067_v39 }
 0x271   : > { %4294 = vst [vmem:[#allocation27_spill] sm:$0xff] %v4063_v24  ;;  %v894_v24 = vadd.f32 %v893_v8, %v3974_v27  ;;  %v1385_v8 = vadd.f32 %v4007_v32, %v2940_v56  ;;  %v1117_v32 = vsel %vm1109_vm4, 0.0, %v1069_v38  ;;  %v1388_v56 = vadd.f32 %v4013_v54, %v4025_v61 }
 0x272   : > { %v4069_v30 = vpop.f32.mrf.mxu0  ;;  %v4302_v23 = vld [vmem:[#allocation24_spill] sm:$0xff] }
 0x273   : > { %4296 = vst [vmem:[#allocation29_spill] sm:$0xff] %v4069_v30  ;;  %v4087_v37 = vpop.permute.xlu0 %2013  ;;  %v1066_v35 = vadd.f32 %v3989_v43, %v894_v24 }
 0x274   : > { %vm2028_vm14 = vcmp.eq.s32.totalorder %v4087_v37, 1 }
 0x27f   : > { %v2988_v12 = vpop.f32.mrf.mxu1 }
 0x280   : > { %v1551_v16 = vadd.f32 %v2988_v12, %v1385_v8  ;;  %v4305_v8 = vld [vmem:[#allocation23_spill] sm:$0xff] }
 0x281   : > { %v1518_v18 = vpop.f32.mrf.mxu1 }
 0x282   : > { %v1549_v59 = vadd.f32 %v1518_v18, %v1377_v41  ;;  %v4307_v41 = vld [vmem:[#allocation25_spill] sm:$0xff] }
 0x283   : > { %v4059_v21 = vpop.f32.mrf.mxu1 }
 0x284   : > { %v3060_v36 = vpop.f32.mrf.mxu0 }
 0x285   : > { %v4065_v50 = vpop.f32.mrf.mxu1 }
 0x286   : > { %4295 = vst [vmem:[#allocation28_spill] sm:$0xff] %v4065_v50  ;;  %v1953_v10 = vpop.f32.mrf.mxu0  ;;  %v4085_v50 = vpop.permute.xlu1 %1104 }
 0x287   : > { %v4071_v34 = vpop.f32.mrf.mxu1  ;;  %vm1113_vm10 = vcmp.eq.s32.totalorder %v4085_v50, 1 }
 0x288   : > { %4297 = vst [vmem:[#allocation30_spill] sm:$0xff] %v4071_v34  ;;  %v910_v34 = vadd.f32 %v909_v46, %v3987_v29  ;;  %v3061_v27 = vpop.f32.mrf.mxu0  ;;  %v1072_v29 = vadd.f32 %v3999_v2, %v918_v11  ;;  %v1116_v2 = vsel %vm1108_vm2, 0.0, %v1068_v25  ;;  %v4116_v46 = vpop.permute.xlu0 %2019  ;;  %v1552_v11 = vadd.f32 %v4059_v21, %v1388_v56  ;;  %v4304_v25 = vld [vmem:[#allocation20_spill] sm:$0xff] }
 0x289   : > { %v4075_v17 = vpop.f32.mrf.mxu1  ;;  %v1559_v22 = vadd.f32 %v1551_v16, %v1116_v2  ;;  %vm2030_vm12 = vcmp.eq.s32.totalorder %v4116_v46, 1  ;;  %v1121_v60 = vsel %vm1113_vm10, 0.0, %v1073_v52 }
 0x28a   : > { %v1070_v43 = vadd.f32 %v4001_v14, %v910_v34  ;;  %v4105_v31 = vpop.permute.xlu1 %2016  ;;  %v1956_v28 = vpop.f32.mrf.mxu0  ;;  %v1114_v14 = vsel %vm1106_vm1, 0.0, %v1066_v35  ;;  %v1120_v51 = vsel %vm1112_vm8, 0.0, %v1072_v29  ;;  %v1560_v38 = vadd.f32 %v1552_v11, %v1117_v32  ;;  %v4309_v11 = vld [vmem:[#allocation27_spill] sm:$0xff] }
 0x28b   : > { %v4082_v30 = vpop.f32.mrf.mxu1  ;;  %v1557_v58 = vadd.f32 %v1549_v59, %v1114_v14  ;;  %v1553_v39 = vadd.f32 %v4075_v17, %v1393_v48  ;;  %v4308_v59 = vld [vmem:[#allocation26_spill] sm:$0xff]  ;;  %vm2029_vm0 = vcmp.eq.s32.totalorder %v4105_v31, 1 }
 0x28c   : > { %v1118_v5 = vsel %vm1110_vm7, 0.0, %v1070_v43  ;;  %v3064_v54 = vpop.f32.mrf.mxu0  ;;  %v4306_v43 = vld [vmem:[#allocation21_spill] sm:$0xff] }
 0x28d   : > { %v4100_v40 = vpop.f32.mrf.mxu1  ;;  %v4300_v33 = vld [vmem:[#allocation28_spill] sm:$0xff]  ;;  %v1396_v44 = vadd.f32 %v4306_v43, %v4305_v8 }
 0x28e   : > { %v4137_v12 = vpop.permute.xlu1 %2022  ;;  %v1969_v29 = vpop.f32.mrf.mxu0 }
 0x28f   : > { %v4301_v20 = vld [vmem:[#allocation30_spill] sm:$0xff]  ;;  %vm2031_vm15 = vcmp.eq.s32.totalorder %v4137_v12, 1 }
 0x290   : > { %v1555_v21 = vadd.f32 %v4301_v20, %v1401_v0 }
 0x29f   : > { %v3036_v49 = vpop.f32.mrf.mxu1 }
 0x2a0   : > { %v1820_v53 = vadd.f32 %v3036_v49, %v4035_v3  ;;  %v1380_v3 = vadd.f32 %v4017_v55, %v4029_v63  ;;  %v4299_v63 = vld [vmem:[#allocation31_spill] sm:$0xff]  ;;  %v1563_v49 = vadd.f32 %v1555_v21, %v1120_v51 }
 0x2a1   : > { %v1811_v62 = vpop.f32.mrf.mxu1  ;;  %vm1111_vm13 = vcmp.eq.s32.totalorder %v4299_v63, 1 }
 0x2a2   : > { %v1986_v7 = vadd.f32 %v3060_v36, %v1820_v53  ;;  %v1812_v42 = vadd.f32 %v1811_v62, %v4041_v6  ;;  %v1550_v18 = vadd.f32 %v4300_v33, %v1380_v3  ;;  %v4303_v36 = vld [vmem:[#allocation22_spill] sm:$0xff] }
 0x2a3   : > { %v3037_v61 = vpop.f32.mrf.mxu1  ;;  %v1404_v35 = vadd.f32 %v4304_v25, %v4303_v36 }
 0x2a4   : > { %v2034_v6 = vsel %vm2026_vm6, 0.0, %v1986_v7  ;;  %v1984_v13 = vadd.f32 %v1953_v10, %v1812_v42  ;;  %v1823_v55 = vadd.f32 %v3037_v61, %v4045_v9  ;;  %v1558_v16 = vadd.f32 %v1550_v18, %v1115_v45  ;;  %v3065_v42 = vpop.f32.mrf.mxu0 }
 0x2a5   : > { %v2042_v24 = vadd.f32 %v2034_v6, %v1559_v22  ;;  %v1814_v26 = vpop.f32.mrf.mxu1  ;;  %v1556_v17 = vadd.f32 %v4082_v30, %v1404_v35  ;;  %v1561_v7 = vadd.f32 %v1553_v39, %v1118_v5  ;;  %v1554_v45 = vadd.f32 %v4100_v40, %v1396_v44 }
 0x2a6   : > { %v2032_v9 = vsel %vm2024_vm5, 0.0, %v1984_v13  ;;  %v1987_v10 = vadd.f32 %v3061_v27, %v1823_v55  ;;  %v1815_v34 = vadd.f32 %v1814_v26, %v4302_v23  ;;  %v1972_v18 = vpop.f32.mrf.mxu0 }
 0x2a7   : > { %v2040_v50 = vadd.f32 %v2032_v9, %v1557_v58  ;;  %v3040_v47 = vpop.f32.mrf.mxu1  ;;  %v2057_v14 = vadd.f32 %v2633_v4, %v2042_v24  ;;  %v1564_v13 = vadd.f32 %v1556_v17, %v1121_v60  ;;  %v4310_v58 = vld [vmem:[#allocation29_spill] sm:$0xff]  ;;  %v1119_v24 = vsel %vm1111_vm13, 0.0, %v4125_v1 }
 0x2a8   : > { %v2035_v15 = vsel %vm2027_vm9, 0.0, %v1987_v10  ;;  %v1985_v27 = vadd.f32 %v1956_v28, %v1815_v34  ;;  %v1836_v2 = vadd.f32 %v3040_v47, %v4307_v41  ;;  %v1562_v37 = vadd.f32 %v1554_v45, %v1119_v24 }
 0x2a9   : > { %v2043_v32 = vadd.f32 %v2035_v15, %v1560_v38  ;;  %v1827_v53 = vpop.f32.mrf.mxu1  ;;  %v2055_v0 = vadd.f32 %v2633_v4, %v2040_v50  ;;  %v2065_v61 = vmax.f32 %v2057_v14, 0.0  ;;  %v2662_v15 = vld [vmem:[%s4255_s6] ss:$0 sm:$0xff] }
 0x2aa   : > { %v2033_v52 = vsel %vm2025_vm11, 0.0, %v1985_v27  ;;  %v1990_v56 = vadd.f32 %v3064_v54, %v1836_v2  ;;  %v1828_v62 = vadd.f32 %v1827_v53, %v4308_v59 }
 0x2ab   : > { %v2058_v57 = vadd.f32 %v2633_v4, %v2043_v32  ;;  %v2041_v3 = vadd.f32 %v2033_v52, %v1558_v16  ;;  %v3041_v28 = vpop.f32.mrf.mxu1  ;;  %v2063_v46 = vmax.f32 %v2055_v0, 0.0 }
 0x2ac   : > { %v2038_v51 = vsel %vm2030_vm12, 0.0, %v1990_v56  ;;  %v1988_v22 = vadd.f32 %v1969_v29, %v1828_v62  ;;  %v1839_v30 = vadd.f32 %v3041_v28, %v4309_v11 }
 0x2ad   : > { %v2066_v19 = vmax.f32 %v2058_v57, 0.0  ;;  %v2046_v48 = vadd.f32 %v2038_v51, %v1563_v49  ;;  %v1830_v54 = vpop.f32.mrf.mxu1  ;;  %v2056_v6 = vadd.f32 %v2633_v4, %v2041_v3 }
 0x2ae   : > { %v2036_v5 = vsel %vm2028_vm14, 0.0, %v1988_v22  ;;  %v1991_v55 = vadd.f32 %v3065_v42, %v1839_v30  ;;  %v1831_v33 = vadd.f32 %v1830_v54, %v4310_v58 }
 0x2af   : > { %v2072_v40 = vpack.c.bf16 %v2066_v19, %v2065_v61  ;;  %v2044_v20 = vadd.f32 %v2036_v5, %v1561_v7  ;;  %v2064_v21 = vmax.f32 %v2056_v6, 0.0  ;;  %v2061_v23 = vadd.f32 %v2633_v4, %v2046_v48 }
 0x2b0   : > { %v2039_v26 = vsel %vm2031_vm15, 0.0, %v1991_v55  ;;  %v1989_v60 = vadd.f32 %v1972_v18, %v1831_v33 }
 0x2b1   : > { %v2047_v9 = vadd.f32 %v2039_v26, %v1564_v13  ;;  %v2071_v10 = vpack.c.bf16 %v2064_v21, %v2063_v46  ;;  %v2059_v25 = vadd.f32 %v2633_v4, %v2044_v20  ;;  %v2069_v63 = vmax.f32 %v2061_v23, 0.0 }
 0x2b2   : > { %v2037_v34 = vsel %vm2029_vm0, 0.0, %v1989_v60 }
 0x2b3   : > { %v2045_v36 = vadd.f32 %v2037_v34, %v1562_v37  ;;  %3106 = vmatprep.mubr.bf16.mxu0 %v2071_v10  ;;  %v2062_v35 = vadd.f32 %v2633_v4, %v2047_v9  ;;  %v2067_v39 = vmax.f32 %v2059_v25, 0.0 }
 0x2b4   : > { %3107 = vmatmul.mubr.bf16.vlgmr.msra.gmra.mxu0 %v2072_v40 }
 0x2b5   : > { %v2060_v38 = vadd.f32 %v2633_v4, %v2045_v36  ;;  %v2070_v1 = vmax.f32 %v2062_v35, 0.0 }
 0x2b7   : > { %v2068_v31 = vmax.f32 %v2060_v38, 0.0  ;;  %v2074_v29 = vpack.c.bf16 %v2070_v1, %v2069_v63 }
 0x2b9   : > { %v2073_v12 = vpack.c.bf16 %v2068_v31, %v2067_v39 }
 0x2bb   : > { %3110 = vmatprep.mubr.bf16.mxu0 %v2073_v12 }
 0x2bc   : > { %3111 = vmatmul.mubr.bf16.gmra.mxu0 %v2074_v29 }
 0x2bf   : > { %v3084_v50 = vpop.f32.mrf.mxu1 }
 0x2c1   : > { %v2224_v47 = vpop.f32.mrf.mxu1 }
 0x2c3   : > { %v3085_v8 = vpop.f32.mrf.mxu1 }
 0x2c5   : > { %v2227_v43 = vpop.f32.mrf.mxu1 }
 0x2c7   : > { %v3088_v4 = vpop.f32.mrf.mxu1 }
 0x2c9   : > { %v2240_v17 = vpop.f32.mrf.mxu1 }
 0x2cb   : > { %v3089_v28 = vpop.f32.mrf.mxu1 }
 0x2cd   : > { %v2243_v48 = vpop.f32.mrf.mxu1 }
 0x374   : > { %v3108_v44 = vpop.f32.mrf.mxu0 }
 0x375   : > { %v2346_v27 = vadd.f32 %v3108_v44, %v3084_v50 }
 0x376   : > { %v2337_v41 = vpop.f32.mrf.mxu0 }
 0x377   : > { %v2377_v2 = vadd.f32 %v2662_v15, %v2346_v27  ;;  %v2338_v16 = vadd.f32 %v2337_v41, %v2224_v47 }
 0x378   : > { %v3109_v49 = vpop.f32.mrf.mxu0 }
 0x379   : > { %v2385_v14 = vmax.f32 %v2377_v2, 0.0  ;;  %v2375_v32 = vadd.f32 %v2662_v15, %v2338_v16  ;;  %v2349_v53 = vadd.f32 %v3109_v49, %v3085_v8 }
 0x37a   : > { %v2340_v52 = vpop.f32.mrf.mxu0 }
 0x37b   : > { %2393 = vst [vmem:[%s4184_s27 + $0x10] sm:$0xff] %v2385_v14  ;;  %v2383_v56 = vmax.f32 %v2375_v32, 0.0  ;;  %v2378_v59 = vadd.f32 %v2662_v15, %v2349_v53  ;;  %v2341_v62 = vadd.f32 %v2340_v52, %v2227_v43 }
 0x37c   : > { %v3112_v7 = vpop.f32.mrf.mxu0 }
 0x37d   : > { %2391 = vst [vmem:[%s4184_s27] sm:$0xff] %v2383_v56  ;;  %v2386_v42 = vmax.f32 %v2378_v59, 0.0  ;;  %v2376_v57 = vadd.f32 %v2662_v15, %v2341_v62  ;;  %v2362_v3 = vadd.f32 %v3112_v7, %v3088_v4 }
 0x37e   : > { %v2353_v0 = vpop.f32.mrf.mxu0 }
 0x37f   : > { %2394 = vst [vmem:[%s4184_s27 + $0x18] sm:$0xff] %v2386_v42  ;;  %v2384_v45 = vmax.f32 %v2376_v57, 0.0  ;;  %v2381_v51 = vadd.f32 %v2662_v15, %v2362_v3  ;;  %v2354_v22 = vadd.f32 %v2353_v0, %v2240_v17 }
 0x380   : > { %v3113_v11 = vpop.f32.mrf.mxu0 }
 0x381   : > { %2392 = vst [vmem:[%s4184_s27 + $0x8] sm:$0xff] %v2384_v45  ;;  %v2389_v30 = vmax.f32 %v2381_v51, 0.0  ;;  %v2379_v61 = vadd.f32 %v2662_v15, %v2354_v22  ;;  %v2365_v19 = vadd.f32 %v3113_v11, %v3089_v28 }
 0x382   : > { %v2356_v54 = vpop.f32.mrf.mxu0 }
 0x383   : > { %2397 = vst [vmem:[%s4184_s27 + $0x30] sm:$0xff] %v2389_v30  ;;  %v2387_v6 = vmax.f32 %v2379_v61, 0.0  ;;  %v2382_v13 = vadd.f32 %v2662_v15, %v2365_v19  ;;  %v2357_v5 = vadd.f32 %v2356_v54, %v2243_v48 }
 0x385   : > { %2395 = vst [vmem:[%s4184_s27 + $0x20] sm:$0xff] %v2387_v6  ;;  %v2390_v55 = vmax.f32 %v2382_v13, 0.0  ;;  %v2380_v58 = vadd.f32 %v2662_v15, %v2357_v5 }
 0x387   : > { %2398 = vst [vmem:[%s4184_s27 + $0x38] sm:$0xff] %v2390_v55  ;;  %v2388_v33 = vmax.f32 %v2380_v58, 0.0 }
 0x389   : > { %2396 = vst [vmem:[%s4184_s27 + $0x28] sm:$0xff] %v2388_v33 }
 0x38a   : > { %3444 = shalt.err (!%p3441_p10)
}
 0x38b   : > { %s3445_s3 = scalar_lea.hbm %s4199_s29, 1024  ;;  %s3449_s19 = scalar_lea.hbm %s4258_s9, 2048 }
 0x38c   : > { %p3446_p7 = scmp.ne.s32.totalorder %s4199_s29, %s3445_s3  ;;  %p3450_p9 = scmp.lt.s32.totalorder %s4199_s29, %s4258_s9 }
 0x38d   : > { %p3451_p0 = scmp.lt.s32.totalorder %s3449_s19, %s3445_s3 }
 0x38e   : > { %p3447_p6 = pnand %p3446_p7, %p3692_p13 }
 0x38f   : > { %p3452_p3 = por %p3451_p0, %p3450_p9 }
 0x390   : > { %p3448_p12 = pneg %p3447_p6 }
 0x392   : > { %p3453_p1 = pnand %p3452_p3, %p3448_p12 }
 0x394   : > { %3456 = shalt.err (!%p3453_p1)
}
 0x395   : > { %s3531_s16 = smov 128   ;;  %s3532_s27 = smov 8  }
 0x396   : > { %3131 = dma.vmem_to_hbm [thread:$0]  (%p3692_p13), %s4193_s28, 1024, %s4199_s29, %s2400_s2, %s3531_s16, %s3531_s16, %s3532_s27  }
 0x397 PF: > { %s4311_s23 = sld [smem:[#allocation18_spill]]  ;;  %s2430_s22 = sand.u32 1, %s3499_s30  }
 0x398   : > { %s4312_s20 = sld [smem:[#allocation17_spill]]  ;;  %s2431_s15 = scalar_lea.sflag [#allocation5], %s2430_s22 }
 0x39d   : > { %p4313_p4 = scmp.ne.s32.totalorder %s4311_s23, 0 }
 0x39e   : > { %p4314_p8 = scmp.ge.s32.totalorder %s4312_s20, 2 }
 0x3a0   : > { %p3148_p5 = pnand %p4314_p8, %p4313_p4 }
 0x3a2   : > { %p3149_p11 = pneg %p3148_p5 }
 0x3a4   : > { %3494 = dma.done.wait (%p3149_p11), %s2431_s15, 1024  }
 0x3a5   : > { %3496 = vsyncadd (%p3149_p11), %s2431_s15, 4294966272  ;;  %s27_s14 = sadd.s32 1, %s4312_s20   ;;  %s4315_s12 = sld [smem:[#allocation16_spill]] }
 0x3a6   : > { %p24_p2 = scmp.ge.s32.totalorder %s27_s14, 4   ;;  %s4316_s13 = sld [smem:[#allocation19_spill]] }
 0x3a7   : > { %s4317_s30 = smov %s3503_s10  ;;  %s4318_s10 = smov %s3507_s11 }
 0x3a8   : > { %s4319_s11 = smov %s3708_s18  ;;  %26 = sbr.rel (!%p24_p2) target bundleno = 12 (0xc), region = 127 }
 0x3ad   :  { %2436 = vsyncpa [#allocation4], 1 }
 0x3ae   :  { %2438 = vsyncpa [#allocation4 + $0x1], 1 }
 0x3af   :  { %2439 = vsyncpa [#allocation7], 1 }
 0x3b0   :  { %2440 = vsyncpa [#allocation10], 1 }
 0x3b1   :  { %2441 = vsyncpa [#allocation5], 1 }
 0x3b2   :  { %2443 = vsyncpa [#allocation5 + $0x1], 1 }

</bundles_post_ra>
